<compile_context>
chip_gen: v5e
topology: v5e:2x2
jax: 0.10.0
libtpu: 0.0.40
codegen_flags: <defaults>
</compile_context>

<pallas_src>
import functools

import jax
import jax.numpy as jnp
import numpy as np
from jax.experimental import pallas as pl
from jax.experimental.pallas import tpu as pltpu

EPS = 1e-5
LANE = 128       # channel padding granularity (lane-dense blocks)
ROW_TILE = 256   # M-tile for the stage-1 1x1 conv (ok on v5e/v6e/v7x)


# ---------------------------------------------------------------------------
# small helpers
# ---------------------------------------------------------------------------
def _round_up(x, m):
    return (x + m - 1) // m * m


def _pad_to(a, shape):
    pads = [(0, t - s) for s, t in zip(a.shape, shape)]
    return jnp.pad(a, pads)


def _vmem_limit_bytes():
    try:
        cap = getattr(pltpu.get_tpu_info(), "vmem_capacity_bytes", None)
        if cap:
            return int(cap * 0.7)      # headroom for double buffering
    except Exception:
        pass
    return 48 * 1024 * 1024


def _fold_bn(gamma, beta, mean, var):
    scale = gamma / jnp.sqrt(var + EPS)
    bias = beta - mean * scale
    return scale.reshape(1, -1), bias.reshape(1, -1)


# ---------------------------------------------------------------------------
# Pallas kernels
# ---------------------------------------------------------------------------
def _conv1x1_bn_relu_kernel(x_ref, w_ref, b_ref, o_ref):
    """out = relu(x @ w_scaled + bias)   (BN scale already folded into w)."""
    y = jnp.dot(x_ref[...], w_ref[...], preferred_element_type=jnp.float32)
    o_ref[...] = jnp.maximum(y + b_ref[...], 0.0).astype(o_ref.dtype)


def _conv2_accum(ph_ref, w2_ref, b2_ref, *, stride, ho, wph):
    """3x3 conv as 9 accumulating matmuls over flat phase slices, + bn2 + relu."""
    s = stride
    m2 = ho * wph
    pp = w2_ref.shape[-1]
    acc = jnp.zeros((m2, pp), jnp.float32)
    for dy in range(3):
        for dx in range(3):
            phidx = (dy % s) * s + (dx % s)
            off = (dy // s) * wph + (dx // s)
            tap = ph_ref[0, phidx, off:off + m2, :]          # (m2, pp) bf16
            acc = acc + jnp.dot(tap, w2_ref[dy * 3 + dx],
                                preferred_element_type=jnp.float32)
    return jnp.maximum(acc + b2_ref[...], 0.0).astype(jnp.bfloat16)


def _stage23_ds_kernel(ph_ref, xs_ref, w2_ref, b2_ref, w3_ref, b3_ref,
                       wsc_ref, bsc_ref, o_ref, *, stride, ho, wph):
    """conv2+bn2+relu, conv3+bn3, 1x1-conv shortcut + bn, add, relu."""
    h = _conv2_accum(ph_ref, w2_ref, b2_ref, stride=stride, ho=ho, wph=wph)
    main = jnp.dot(h, w3_ref[...], preferred_element_type=jnp.float32) + b3_ref[...]
    sc = jnp.dot(xs_ref[0], wsc_ref[...], preferred_element_type=jnp.float32) + bsc_ref[...]
    o_ref[0] = jnp.maximum(main + sc, 0.0)


def _stage23_id_kernel(ph_ref, xs_ref, w2_ref, b2_ref, w3_ref, b3_ref,
                       o_ref, *, stride, ho, wph):
    """Same as above but the shortcut is a direct residual add (identity)."""
    h = _conv2_accum(ph_ref, w2_ref, b2_ref, stride=stride, ho=ho, wph=wph)
    main = jnp.dot(h, w3_ref[...], preferred_element_type=jnp.float32) + b3_ref[...]
    o_ref[0] = jnp.maximum(main + xs_ref[0], 0.0)


# ---------------------------------------------------------------------------
# pallas_call wrappers
# ---------------------------------------------------------------------------
def conv1x1_bn_relu(x_flat, w, b, tm=ROW_TILE):
    m, kin = x_flat.shape
    n_out = w.shape[1]
    mp = _round_up(m, tm)
    if mp != m:
        x_flat = jnp.pad(x_flat, ((0, mp - m), (0, 0)))
    out = pl.pallas_call(
        _conv1x1_bn_relu_kernel,
        out_shape=jax.ShapeDtypeStruct((mp, n_out), jnp.bfloat16),
        grid=(mp // tm,),
        in_specs=[
            pl.BlockSpec((tm, kin), lambda i: (i, 0)),
            pl.BlockSpec((kin, n_out), lambda i: (0, 0)),
            pl.BlockSpec((1, n_out), lambda i: (0, 0)),
        ],
        out_specs=pl.BlockSpec((tm, n_out), lambda i: (i, 0)),
        compiler_params=pltpu.CompilerParams(
            dimension_semantics=("parallel",),
            vmem_limit_bytes=_vmem_limit_bytes()),
    )(x_flat, w, b)
    return out[:m]


def stage23(phases, xs, w2, b2, w3, b3, wsc, bsc, *, stride, ho, wph, downsample):
    n, nph, lf, pp = phases.shape
    coutp = w3.shape[1]
    m2 = ho * wph
    full2 = lambda i: (0, 0)
    full3 = lambda i: (0, 0, 0)
    tiled3 = lambda i: (i, 0, 0)
    tiled4 = lambda i: (i, 0, 0, 0)

    in_specs = [
        pl.BlockSpec((1, nph, lf, pp), tiled4),     # stride-phase slabs of y1
        pl.BlockSpec((1, m2, xs.shape[-1]), tiled3),  # shortcut input
        pl.BlockSpec((9, pp, pp), full3),           # conv2 taps (scale-folded)
        pl.BlockSpec((1, pp), full2),               # bn2 bias
        pl.BlockSpec((pp, coutp), full2),           # conv3 weight (scale-folded)
        pl.BlockSpec((1, coutp), full2),            # bn3 bias
    ]
    args = [phases, xs, w2, b2, w3, b3]
    if downsample:
        kernel = functools.partial(_stage23_ds_kernel, stride=stride, ho=ho, wph=wph)
        in_specs += [pl.BlockSpec((xs.shape[-1], coutp), full2),   # shortcut weight
                     pl.BlockSpec((1, coutp), full2)]              # shortcut bias
        args += [wsc, bsc]
    else:
        kernel = functools.partial(_stage23_id_kernel, stride=stride, ho=ho, wph=wph)

    return pl.pallas_call(
        kernel,
        out_shape=jax.ShapeDtypeStruct((n, m2, coutp), jnp.float32),
        grid=(n,),
        in_specs=in_specs,
        out_specs=pl.BlockSpec((1, m2, coutp), tiled3),
        compiler_params=pltpu.CompilerParams(
            dimension_semantics=("parallel",),
            vmem_limit_bytes=_vmem_limit_bytes()),
    )(*args)


# ---------------------------------------------------------------------------
# stride-phase ("space-to-depth") decomposition of y1 for the in-kernel conv2
# ---------------------------------------------------------------------------
def _make_phases(y1, stride):
    """y1: (N, H, W, Pp) bf16 -> (N, s*s, Hph*Wph+e, Pp) phase slabs.

    Tap (dy, dx) of the 3x3/stride-s conv becomes a *contiguous* flat slice
    [off : off+Ho*Wph] of phase (dy%s, dx%s) with off = (dy//s)*Wph + (dx//s).
    The extra e = 2//s columns per output row are garbage and cropped later.
    """
    n, h, w, pp = y1.shape
    s = stride
    e = 2 // s
    ho = (h - 1) // s + 1
    wo = (w - 1) // s + 1
    hph, wph = ho + e, wo + e
    hpad = max(h + 2, (s - 1) + (hph - 1) * s + 1)
    wpad = max(w + 2, (s - 1) + (wph - 1) * s + 1)
    y1p = jnp.pad(y1, ((0, 0), (1, hpad - h - 1), (1, wpad - w - 1), (0, 0)))
    slabs = []
    for py in range(s):
        for px in range(s):
            sl = y1p[:, py:py + (hph - 1) * s + 1:s,
                     px:px + (wph - 1) * s + 1:s, :]
            slabs.append(sl.reshape(n, hph * wph, pp))
    ph = jnp.stack(slabs, axis=1)                       # (N, s*s, Hph*Wph, Pp)
    if e:
        ph = jnp.pad(ph, ((0, 0), (0, 0), (0, e), (0, 0)))
    return ph, ho, wo, wph


# ---------------------------------------------------------------------------
# Bottleneck forward (glue in plain JAX, hot path in Pallas)
# ---------------------------------------------------------------------------
def bottleneck_forward(x_nchw, params, stride):
    n, cin, h, w = x_nchw.shape
    planes = params["conv1_w"].shape[0]
    cout = 4 * planes
    cinp = _round_up(cin, LANE)
    pp = _round_up(planes, LANE)
    coutp = _round_up(cout, LANE)

    x = jnp.transpose(x_nchw, (0, 2, 3, 1)).astype(jnp.float32)    # NHWC
    xp = jnp.pad(x, ((0, 0), (0, 0), (0, 0), (0, cinp - cin)))      # channel pad

    # --- stage 1: conv1 (1x1) + bn1 + relu (Pallas, bf16 MXU) ---
    s1, b1 = _fold_bn(*params["bn1"])
    w1 = params["conv1_w"][:, :, 0, 0].T * s1                       # (Cin, P)
    w1 = _pad_to(w1, (cinp, pp)).astype(jnp.bfloat16)
    b1 = _pad_to(b1, (1, pp))
    x_flat = xp.reshape(n * h * w, cinp).astype(jnp.bfloat16)
    y1 = conv1x1_bn_relu(x_flat, w1, b1).reshape(n, h, w, pp)       # bf16

    # --- glue: one bf16 pass to pad + phase-split y1 (no 9x im2col) ---
    phases, ho, wo, wph = _make_phases(y1, stride)
    m2 = ho * wph

    # --- fold BN into the remaining weights ---
    s2, b2 = _fold_bn(*params["bn2"])
    w2 = jnp.transpose(params["conv2_w"], (2, 3, 1, 0)) * s2.reshape(1, 1, 1, -1)
    w2 = w2.reshape(9, planes, planes)
    w2 = jnp.pad(w2, ((0, 0), (0, pp - planes), (0, pp - planes))).astype(jnp.bfloat16)
    b2p = _pad_to(b2, (1, pp))

    s3, b3 = _fold_bn(*params["bn3"])
    w3 = params["conv3_w"][:, :, 0, 0].T * s3                        # (P, 4P)
    w3 = _pad_to(w3, (pp, coutp)).astype(jnp.bfloat16)
    b3p = _pad_to(b3, (1, coutp))

    has_ds = (stride != 1) or (cin != cout)
    if has_ds:
        ssc, bsc = _fold_bn(*params["sc_bn"])
        wsc = params["sc_w"][:, :, 0, 0].T * ssc                     # (Cin, 4P)
        wsc = _pad_to(wsc, (cinp, coutp)).astype(jnp.bfloat16)
        bscp = _pad_to(bsc, (1, coutp))
        xs = xp[:, ::stride, ::stride, :]                            # (N, Ho, Wo, Cinp)
        xs = jnp.pad(xs, ((0, 0), (0, 0), (0, wph - wo), (0, 0)))
        xs = xs.reshape(n, m2, cinp).astype(jnp.bfloat16)
        out = stage23(phases, xs, w2, b2p, w3, b3p, wsc, bscp,
                      stride=stride, ho=ho, wph=wph, downsample=True)
    else:
        # identity shortcut: direct residual add (f32, exact), no eye-matmul
        xs = jnp.pad(xp, ((0, 0), (0, 0), (0, wph - w), (0, 0)))
        xs = xs.reshape(n, m2, coutp)
        out = stage23(phases, xs, w2, b2p, w3, b3p, None, None,
                      stride=stride, ho=ho, wph=wph, downsample=False)

    out = out.reshape(n, ho, wph, coutp)[:, :, :wo, :cout]
    return jnp.transpose(out, (0, 3, 1, 2))                          # NCHW


# ---------------------------------------------------------------------------
# Pure-JAX reference (lax.conv, f32) for validation
# ---------------------------------------------------------------------------
def _conv_ref(x, w, stride=1, padding=0):
    return jax.lax.conv_general_dilated(
        x, w, (stride, stride), [(padding, padding)] * 2,
        dimension_numbers=("NCHW", "OIHW", "NCHW"))


def _bn_ref(x, gamma, beta, mean, var):
    scale = gamma / jnp.sqrt(var + EPS)
    bias = beta - mean * scale
    return x * scale[None, :, None, None] + bias[None, :, None, None]


def bottleneck_reference(x, params, stride):
    cin = x.shape[1]
    planes = params["conv1_w"].shape[0]
    cout = 4 * planes
    out = jax.nn.relu(_bn_ref(_conv_ref(x, params["conv1_w"]), *params["bn1"]))
    out = jax.nn.relu(_bn_ref(_conv_ref(out, params["conv2_w"], stride, 1), *params["bn2"]))
    out = _bn_ref(_conv_ref(out, params["conv3_w"]), *params["bn3"])
    if stride != 1 or cin != cout:
        sc = _bn_ref(_conv_ref(x, params["sc_w"], stride, 0), *params["sc_bn"])
    else:
        sc = x
    return jax.nn.relu(out + sc)


# ---------------------------------------------------------------------------
# Deterministic parameter construction
# ---------------------------------------------------------------------------
def make_params(key, in_planes, planes):
    cout = 4 * planes
    keys = jax.random.split(key, 8)

    def bn(k, c):
        k1, k2, k3, k4 = jax.random.split(k, 4)
        gamma = jax.random.uniform(k1, (c,), jnp.float32, 0.5, 1.5)
        beta = jax.random.normal(k2, (c,), jnp.float32) * 0.1
        mean = jax.random.normal(k3, (c,), jnp.float32) * 0.1
        var = jax.random.uniform(k4, (c,), jnp.float32, 0.5, 1.5)
        return (gamma, beta, mean, var)

    return {
        "conv1_w": jax.random.normal(keys[0], (planes, in_planes, 1, 1), jnp.float32) * 0.2,
        "bn1": bn(keys[1], planes),
        "conv2_w": jax.random.normal(keys[2], (planes, planes, 3, 3), jnp.float32) * 0.1,
        "bn2": bn(keys[3], planes),
        "conv3_w": jax.random.normal(keys[4], (cout, planes, 1, 1), jnp.float32) * 0.2,
        "bn3": bn(keys[5], cout),
        "sc_w": jax.random.normal(keys[6], (cout, in_planes, 1, 1), jnp.float32) * 0.2,
        "sc_bn": bn(keys[7], cout),
    }


if __name__ == "__main__":
    key = jax.random.PRNGKey(0)
    k1, k2, k3, k4 = jax.random.split(key, 4)

    # bf16 MXU operands vs f32 reference -> loose tolerance
    RTOL = ATOL = 5e-2

    # --- case 1: downsample block (stride=2, cin != 4*planes) ---
    N, IN_PLANES, PLANES, H, W, STRIDE = 2, 8, 4, 16, 16, 2
    x = jax.random.normal(k1, (N, IN_PLANES, H, W), jnp.float32)
    params = make_params(k2, IN_PLANES, PLANES)
    fwd = jax.jit(functools.partial(bottleneck_forward, stride=STRIDE))
    out = jax.block_until_ready(fwd(x, params))
    ref = jax.block_until_ready(bottleneck_reference(x, params, STRIDE))
    assert out.shape == (N, 4 * PLANES, (H - 1) // STRIDE + 1, (W - 1) // STRIDE + 1), out.shape
    np.testing.assert_allclose(np.asarray(out), np.asarray(ref), rtol=RTOL, atol=ATOL)

    # --- case 2: identity-shortcut block (stride=1, cin == 4*planes) ---
    N2, IN_PLANES2, PLANES2, STRIDE2 = 2, 16, 4, 1
    x2 = jax.random.normal(k3, (N2, IN_PLANES2, H, W), jnp.float32)
    params2 = make_params(k4, IN_PLANES2, PLANES2)
    fwd2 = jax.jit(functools.partial(bottleneck_forward, stride=STRIDE2))
    out2 = jax.block_until_ready(fwd2(x2, params2))
    ref2 = jax.block_until_ready(bottleneck_reference(x2, params2, STRIDE2))
    assert out2.shape == (N2, 4 * PLANES2, H, W), out2.shape
    np.testing.assert_allclose(np.asarray(out2), np.asarray(ref2), rtol=RTOL, atol=ATOL)

    print("KERNEL_OK")
</pallas_src>

<mosaic_0001>
module attributes {stable_mosaic.version = 11 : i64} {
  func.func @_conv1x1_bn_relu_kernel(%arg0: i32, %arg1: memref<256x128xbf16, #tpu.memory_space<vmem>>, %arg2: memref<128x128xbf16, #tpu.memory_space<vmem>>, %arg3: memref<1x128xf32, #tpu.memory_space<vmem>>, %arg4: memref<256x128xbf16, #tpu.memory_space<vmem>>) attributes {dimension_semantics = [#tpu.dimension_semantics<parallel>], iteration_bounds = array<i64: 2>, scalar_prefetch = 0 : i64, scratch_operands = 0 : i64, tpu.core_type = #tpu.core_type<tc>, window_params = [{transform_indices = @transform_0, window_bounds = array<i64: 256, 128>}, {pipeline_mode = #tpu.pipeline_mode<synchronous>, transform_indices = @transform_1, window_bounds = array<i64: 128, 128>}, {pipeline_mode = #tpu.pipeline_mode<synchronous>, transform_indices = @transform_2, window_bounds = array<i64: 1, 128>}, {transform_indices = @transform_3, window_bounds = array<i64: 256, 128>}]} {
    %c0 = arith.constant 0 : index
    %c0_0 = arith.constant 0 : index
    %0 = vector.load %arg1[%c0, %c0_0] : memref<256x128xbf16, #tpu.memory_space<vmem>>, vector<256x128xbf16>
    %c0_1 = arith.constant 0 : index
    %c0_2 = arith.constant 0 : index
    %1 = vector.load %arg2[%c0_1, %c0_2] : memref<128x128xbf16, #tpu.memory_space<vmem>>, vector<128x128xbf16>
    %cst = arith.constant dense<0.000000e+00> : vector<256x128xf32>
    %2 = tpu.matmul %0, %1, %cst {dimension_numbers = #tpu.dot_dimension_numbers<[1], [0], [0], [1], [0, 0, 1, 1], [], []>} : vector<256x128xbf16>, vector<128x128xbf16>, vector<256x128xf32> -> vector<256x128xf32>
    %c0_3 = arith.constant 0 : index
    %c0_4 = arith.constant 0 : index
    %3 = vector.load %arg3[%c0_3, %c0_4] : memref<1x128xf32, #tpu.memory_space<vmem>>, vector<1x128xf32>
    %4 = vector.broadcast %3 : vector<1x128xf32> to vector<256x128xf32>
    %5 = arith.addf %2, %4 : vector<256x128xf32>
    %cst_5 = arith.constant 0.000000e+00 : f32
    %6 = vector.broadcast %cst_5 : f32 to vector<256x128xf32>
    %7 = arith.maximumf %5, %6 : vector<256x128xf32>
    %8 = arith.truncf %7 : vector<256x128xf32> to vector<256x128xbf16>
    %c0_6 = arith.constant 0 : index
    %c0_7 = arith.constant 0 : index
    %9 = vector.load %arg4[%c0_6, %c0_7] : memref<256x128xbf16, #tpu.memory_space<vmem>>, vector<256x128xbf16>
    tpu.vector_store %arg4[%c0_6, %c0_7], %8 {strides = array<i32>} : memref<256x128xbf16, #tpu.memory_space<vmem>>, vector<256x128xbf16>,
    return
  }
  func.func @transform_0(%arg0: i32) -> (i32, i32) {
    %c0_i32 = arith.constant 0 : i32
    %c0_i32_0 = arith.constant 0 : i32
    return %arg0, %c0_i32 : i32, i32
  }
  func.func @transform_1(%arg0: i32) -> (i32, i32) {
    %c0_i32 = arith.constant 0 : i32
    %c0_i32_0 = arith.constant 0 : i32
    %c0_i32_1 = arith.constant 0 : i32
    return %c0_i32, %c0_i32_0 : i32, i32
  }
  func.func @transform_2(%arg0: i32) -> (i32, i32) {
    %c0_i32 = arith.constant 0 : i32
    %c0_i32_0 = arith.constant 0 : i32
    %c0_i32_1 = arith.constant 0 : i32
    return %c0_i32, %c0_i32_0 : i32, i32
  }
  func.func @transform_3(%arg0: i32) -> (i32, i32) {
    %c0_i32 = arith.constant 0 : i32
    %c0_i32_0 = arith.constant 0 : i32
    return %arg0, %c0_i32 : i32, i32
  }
}

module attributes {stable_mosaic.version = 11 : i64} {
  func.func @_stage23_ds_kernel(%arg0: i32, %arg1: memref<1x4x82x128xbf16, #tpu.memory_space<vmem>>, %arg2: memref<1x72x128xbf16, #tpu.memory_space<vmem>>, %arg3: memref<9x128x128xbf16, #tpu.memory_space<vmem>>, %arg4: memref<1x128xf32, #tpu.memory_space<vmem>>, %arg5: memref<128x128xbf16, #tpu.memory_space<vmem>>, %arg6: memref<1x128xf32, #tpu.memory_space<vmem>>, %arg7: memref<128x128xbf16, #tpu.memory_space<vmem>>, %arg8: memref<1x128xf32, #tpu.memory_space<vmem>>, %arg9: memref<1x72x128xf32, #tpu.memory_space<vmem>>) attributes {dimension_semantics = [#tpu.dimension_semantics<parallel>], iteration_bounds = array<i64: 2>, scalar_prefetch = 0 : i64, scratch_operands = 0 : i64, tpu.core_type = #tpu.core_type<tc>, window_params = [{transform_indices = @transform_0, window_bounds = array<i64: 1, 4, 82, 128>}, {transform_indices = @transform_1, window_bounds = array<i64: 1, 72, 128>}, {pipeline_mode = #tpu.pipeline_mode<synchronous>, transform_indices = @transform_2, window_bounds = array<i64: 9, 128, 128>}, {pipeline_mode = #tpu.pipeline_mode<synchronous>, transform_indices = @transform_3, window_bounds = array<i64: 1, 128>}, {pipeline_mode = #tpu.pipeline_mode<synchronous>, transform_indices = @transform_4, window_bounds = array<i64: 128, 128>}, {pipeline_mode = #tpu.pipeline_mode<synchronous>, transform_indices = @transform_5, window_bounds = array<i64: 1, 128>}, {pipeline_mode = #tpu.pipeline_mode<synchronous>, transform_indices = @transform_6, window_bounds = array<i64: 128, 128>}, {pipeline_mode = #tpu.pipeline_mode<synchronous>, transform_indices = @transform_7, window_bounds = array<i64: 1, 128>}, {transform_indices = @transform_8, window_bounds = array<i64: 1, 72, 128>}]} {
    %cst = arith.constant 0.000000e+00 : f32
    %0 = vector.broadcast %cst : f32 to vector<72x128xf32>
    %c0 = arith.constant 0 : index
    %c0_0 = arith.constant 0 : index
    %c0_1 = arith.constant 0 : index
    %c0_2 = arith.constant 0 : index
    %1 = vector.load %arg1[%c0, %c0_0, %c0_1, %c0_2] : memref<1x4x82x128xbf16, #tpu.memory_space<vmem>>, vector<1x1x72x128xbf16>
    %2 = vector.shape_cast %1 : vector<1x1x72x128xbf16> to vector<72x128xbf16>
    %c0_3 = arith.constant 0 : index
    %c0_4 = arith.constant 0 : index
    %c0_5 = arith.constant 0 : index
    %3 = vector.load %arg3[%c0_3, %c0_4, %c0_5] : memref<9x128x128xbf16, #tpu.memory_space<vmem>>, vector<1x128x128xbf16>
    %4 = vector.shape_cast %3 : vector<1x128x128xbf16> to vector<128x128xbf16>
    %cst_6 = arith.constant dense<0.000000e+00> : vector<72x128xf32>
    %5 = tpu.matmul %2, %4, %cst_6 {dimension_numbers = #tpu.dot_dimension_numbers<[1], [0], [0], [1], [0, 0, 1, 1], [], []>} : vector<72x128xbf16>, vector<128x128xbf16>, vector<72x128xf32> -> vector<72x128xf32>
    %6 = arith.addf %0, %5 : vector<72x128xf32>
    %c0_7 = arith.constant 0 : index
    %c1 = arith.constant 1 : index
    %c0_8 = arith.constant 0 : index
    %c0_9 = arith.constant 0 : index
    %7 = vector.load %arg1[%c0_7, %c1, %c0_8, %c0_9] : memref<1x4x82x128xbf16, #tpu.memory_space<vmem>>, vector<1x1x72x128xbf16>
    %8 = vector.shape_cast %7 : vector<1x1x72x128xbf16> to vector<72x128xbf16>
    %c1_10 = arith.constant 1 : index
    %c0_11 = arith.constant 0 : index
    %c0_12 = arith.constant 0 : index
    %9 = vector.load %arg3[%c1_10, %c0_11, %c0_12] : memref<9x128x128xbf16, #tpu.memory_space<vmem>>, vector<1x128x128xbf16>
    %10 = vector.shape_cast %9 : vector<1x128x128xbf16> to vector<128x128xbf16>
    %cst_13 = arith.constant dense<0.000000e+00> : vector<72x128xf32>
    %11 = tpu.matmul %8, %10, %cst_13 {dimension_numbers = #tpu.dot_dimension_numbers<[1], [0], [0], [1], [0, 0, 1, 1], [], []>} : vector<72x128xbf16>, vector<128x128xbf16>, vector<72x128xf32> -> vector<72x128xf32>
    %12 = arith.addf %6, %11 : vector<72x128xf32>
    %c0_14 = arith.constant 0 : index
    %c0_15 = arith.constant 0 : index
    %c1_16 = arith.constant 1 : index
    %c0_17 = arith.constant 0 : index
    %13 = vector.load %arg1[%c0_14, %c0_15, %c1_16, %c0_17] : memref<1x4x82x128xbf16, #tpu.memory_space<vmem>>, vector<1x1x72x128xbf16>
    %14 = vector.shape_cast %13 : vector<1x1x72x128xbf16> to vector<72x128xbf16>
    %c2 = arith.constant 2 : index
    %c0_18 = arith.constant 0 : index
    %c0_19 = arith.constant 0 : index
    %15 = vector.load %arg3[%c2, %c0_18, %c0_19] : memref<9x128x128xbf16, #tpu.memory_space<vmem>>, vector<1x128x128xbf16>
    %16 = vector.shape_cast %15 : vector<1x128x128xbf16> to vector<128x128xbf16>
    %cst_20 = arith.constant dense<0.000000e+00> : vector<72x128xf32>
    %17 = tpu.matmul %14, %16, %cst_20 {dimension_numbers = #tpu.dot_dimension_numbers<[1], [0], [0], [1], [0, 0, 1, 1], [], []>} : vector<72x128xbf16>, vector<128x128xbf16>, vector<72x128xf32> -> vector<72x128xf32>
    %18 = arith.addf %12, %17 : vector<72x128xf32>
    %c0_21 = arith.constant 0 : index
    %c2_22 = arith.constant 2 : index
    %c0_23 = arith.constant 0 : index
    %c0_24 = arith.constant 0 : index
    %19 = vector.load %arg1[%c0_21, %c2_22, %c0_23, %c0_24] : memref<1x4x82x128xbf16, #tpu.memory_space<vmem>>, vector<1x1x72x128xbf16>
    %20 = vector.shape_cast %19 : vector<1x1x72x128xbf16> to vector<72x128xbf16>
    %c3 = arith.constant 3 : index
    %c0_25 = arith.constant 0 : index
    %c0_26 = arith.constant 0 : index
    %21 = vector.load %arg3[%c3, %c0_25, %c0_26] : memref<9x128x128xbf16, #tpu.memory_space<vmem>>, vector<1x128x128xbf16>
    %22 = vector.shape_cast %21 : vector<1x128x128xbf16> to vector<128x128xbf16>
    %cst_27 = arith.constant dense<0.000000e+00> : vector<72x128xf32>
    %23 = tpu.matmul %20, %22, %cst_27 {dimension_numbers = #tpu.dot_dimension_numbers<[1], [0], [0], [1], [0, 0, 1, 1], [], []>} : vector<72x128xbf16>, vector<128x128xbf16>, vector<72x128xf32> -> vector<72x128xf32>
    %24 = arith.addf %18, %23 : vector<72x128xf32>
    %c0_28 = arith.constant 0 : index
    %c3_29 = arith.constant 3 : index
    %c0_30 = arith.constant 0 : index
    %c0_31 = arith.constant 0 : index
    %25 = vector.load %arg1[%c0_28, %c3_29, %c0_30, %c0_31] : memref<1x4x82x128xbf16, #tpu.memory_space<vmem>>, vector<1x1x72x128xbf16>
    %26 = vector.shape_cast %25 : vector<1x1x72x128xbf16> to vector<72x128xbf16>
    %c4 = arith.constant 4 : index
    %c0_32 = arith.constant 0 : index
    %c0_33 = arith.constant 0 : index
    %27 = vector.load %arg3[%c4, %c0_32, %c0_33] : memref<9x128x128xbf16, #tpu.memory_space<vmem>>, vector<1x128x128xbf16>
    %28 = vector.shape_cast %27 : vector<1x128x128xbf16> to vector<128x128xbf16>
    %cst_34 = arith.constant dense<0.000000e+00> : vector<72x128xf32>
    %29 = tpu.matmul %26, %28, %cst_34 {dimension_numbers = #tpu.dot_dimension_numbers<[1], [0], [0], [1], [0, 0, 1, 1], [], []>} : vector<72x128xbf16>, vector<128x128xbf16>, vector<72x128xf32> -> vector<72x128xf32>
    %30 = arith.addf %24, %29 : vector<72x128xf32>
    %c0_35 = arith.constant 0 : index
    %c2_36 = arith.constant 2 : index
    %c1_37 = arith.constant 1 : index
    %c0_38 = arith.constant 0 : index
    %31 = vector.load %arg1[%c0_35, %c2_36, %c1_37, %c0_38] : memref<1x4x82x128xbf16, #tpu.memory_space<vmem>>, vector<1x1x72x128xbf16>
    %32 = vector.shape_cast %31 : vector<1x1x72x128xbf16> to vector<72x128xbf16>
    %c5 = arith.constant 5 : index
    %c0_39 = arith.constant 0 : index
    %c0_40 = arith.constant 0 : index
    %33 = vector.load %arg3[%c5, %c0_39, %c0_40] : memref<9x128x128xbf16, #tpu.memory_space<vmem>>, vector<1x128x128xbf16>
    %34 = vector.shape_cast %33 : vector<1x128x128xbf16> to vector<128x128xbf16>
    %cst_41 = arith.constant dense<0.000000e+00> : vector<72x128xf32>
    %35 = tpu.matmul %32, %34, %cst_41 {dimension_numbers = #tpu.dot_dimension_numbers<[1], [0], [0], [1], [0, 0, 1, 1], [], []>} : vector<72x128xbf16>, vector<128x128xbf16>, vector<72x128xf32> -> vector<72x128xf32>
    %36 = arith.addf %30, %35 : vector<72x128xf32>
    %c0_42 = arith.constant 0 : index
    %c0_43 = arith.constant 0 : index
    %c9 = arith.constant 9 : index
    %c0_44 = arith.constant 0 : index
    %37 = vector.load %arg1[%c0_42, %c0_43, %c9, %c0_44] : memref<1x4x82x128xbf16, #tpu.memory_space<vmem>>, vector<1x1x72x128xbf16>
    %38 = vector.shape_cast %37 : vector<1x1x72x128xbf16> to vector<72x128xbf16>
    %c6 = arith.constant 6 : index
    %c0_45 = arith.constant 0 : index
    %c0_46 = arith.constant 0 : index
    %39 = vector.load %arg3[%c6, %c0_45, %c0_46] : memref<9x128x128xbf16, #tpu.memory_space<vmem>>, vector<1x128x128xbf16>
    %40 = vector.shape_cast %39 : vector<1x128x128xbf16> to vector<128x128xbf16>
    %cst_47 = arith.constant dense<0.000000e+00> : vector<72x128xf32>
    %41 = tpu.matmul %38, %40, %cst_47 {dimension_numbers = #tpu.dot_dimension_numbers<[1], [0], [0], [1], [0, 0, 1, 1], [], []>} : vector<72x128xbf16>, vector<128x128xbf16>, vector<72x128xf32> -> vector<72x128xf32>
    %42 = arith.addf %36, %41 : vector<72x128xf32>
    %c0_48 = arith.constant 0 : index
    %c1_49 = arith.constant 1 : index
    %c9_50 = arith.constant 9 : index
    %c0_51 = arith.constant 0 : index
    %43 = vector.load %arg1[%c0_48, %c1_49, %c9_50, %c0_51] : memref<1x4x82x128xbf16, #tpu.memory_space<vmem>>, vector<1x1x72x128xbf16>
    %44 = vector.shape_cast %43 : vector<1x1x72x128xbf16> to vector<72x128xbf16>
    %c7 = arith.constant 7 : index
    %c0_52 = arith.constant 0 : index
    %c0_53 = arith.constant 0 : index
    %45 = vector.load %arg3[%c7, %c0_52, %c0_53] : memref<9x128x128xbf16, #tpu.memory_space<vmem>>, vector<1x128x128xbf16>
    %46 = vector.shape_cast %45 : vector<1x128x128xbf16> to vector<128x128xbf16>
    %cst_54 = arith.constant dense<0.000000e+00> : vector<72x128xf32>
    %47 = tpu.matmul %44, %46, %cst_54 {dimension_numbers = #tpu.dot_dimension_numbers<[1], [0], [0], [1], [0, 0, 1, 1], [], []>} : vector<72x128xbf16>, vector<128x128xbf16>, vector<72x128xf32> -> vector<72x128xf32>
    %48 = arith.addf %42, %47 : vector<72x128xf32>
    %c0_55 = arith.constant 0 : index
    %c0_56 = arith.constant 0 : index
    %c10 = arith.constant 10 : index
    %c0_57 = arith.constant 0 : index
    %49 = vector.load %arg1[%c0_55, %c0_56, %c10, %c0_57] : memref<1x4x82x128xbf16, #tpu.memory_space<vmem>>, vector<1x1x72x128xbf16>
    %50 = vector.shape_cast %49 : vector<1x1x72x128xbf16> to vector<72x128xbf16>
    %c8 = arith.constant 8 : index
    %c0_58 = arith.constant 0 : index
    %c0_59 = arith.constant 0 : index
    %51 = vector.load %arg3[%c8, %c0_58, %c0_59] : memref<9x128x128xbf16, #tpu.memory_space<vmem>>, vector<1x128x128xbf16>
    %52 = vector.shape_cast %51 : vector<1x128x128xbf16> to vector<128x128xbf16>
    %cst_60 = arith.constant dense<0.000000e+00> : vector<72x128xf32>
    %53 = tpu.matmul %50, %52, %cst_60 {dimension_numbers = #tpu.dot_dimension_numbers<[1], [0], [0], [1], [0, 0, 1, 1], [], []>} : vector<72x128xbf16>, vector<128x128xbf16>, vector<72x128xf32> -> vector<72x128xf32>
    %54 = arith.addf %48, %53 : vector<72x128xf32>
    %c0_61 = arith.constant 0 : index
    %c0_62 = arith.constant 0 : index
    %55 = vector.load %arg4[%c0_61, %c0_62] : memref<1x128xf32, #tpu.memory_space<vmem>>, vector<1x128xf32>
    %56 = vector.broadcast %55 : vector<1x128xf32> to vector<72x128xf32>
    %57 = arith.addf %54, %56 : vector<72x128xf32>
    %cst_63 = arith.constant 0.000000e+00 : f32
    %58 = vector.broadcast %cst_63 : f32 to vector<72x128xf32>
    %59 = arith.maximumf %57, %58 : vector<72x128xf32>
    %60 = arith.truncf %59 : vector<72x128xf32> to vector<72x128xbf16>
    %c0_64 = arith.constant 0 : index
    %c0_65 = arith.constant 0 : index
    %61 = vector.load %arg5[%c0_64, %c0_65] : memref<128x128xbf16, #tpu.memory_space<vmem>>, vector<128x128xbf16>
    %cst_66 = arith.constant dense<0.000000e+00> : vector<72x128xf32>
    %62 = tpu.matmul %60, %61, %cst_66 {dimension_numbers = #tpu.dot_dimension_numbers<[1], [0], [0], [1], [0, 0, 1, 1], [], []>} : vector<72x128xbf16>, vector<128x128xbf16>, vector<72x128xf32> -> vector<72x128xf32>
    %c0_67 = arith.constant 0 : index
    %c0_68 = arith.constant 0 : index
    %63 = vector.load %arg6[%c0_67, %c0_68] : memref<1x128xf32, #tpu.memory_space<vmem>>, vector<1x128xf32>
    %64 = vector.broadcast %63 : vector<1x128xf32> to vector<72x128xf32>
    %65 = arith.addf %62, %64 : vector<72x128xf32>
    %c0_69 = arith.constant 0 : index
    %c0_70 = arith.constant 0 : index
    %c0_71 = arith.constant 0 : index
    %66 = vector.load %arg2[%c0_69, %c0_70, %c0_71] : memref<1x72x128xbf16, #tpu.memory_space<vmem>>, vector<1x72x128xbf16>
    %67 = vector.shape_cast %66 : vector<1x72x128xbf16> to vector<72x128xbf16>
    %c0_72 = arith.constant 0 : index
    %c0_73 = arith.constant 0 : index
    %68 = vector.load %arg7[%c0_72, %c0_73] : memref<128x128xbf16, #tpu.memory_space<vmem>>, vector<128x128xbf16>
    %cst_74 = arith.constant dense<0.000000e+00> : vector<72x128xf32>
    %69 = tpu.matmul %67, %68, %cst_74 {dimension_numbers = #tpu.dot_dimension_numbers<[1], [0], [0], [1], [0, 0, 1, 1], [], []>} : vector<72x128xbf16>, vector<128x128xbf16>, vector<72x128xf32> -> vector<72x128xf32>
    %c0_75 = arith.constant 0 : index
    %c0_76 = arith.constant 0 : index
    %70 = vector.load %arg8[%c0_75, %c0_76] : memref<1x128xf32, #tpu.memory_space<vmem>>, vector<1x128xf32>
    %71 = vector.broadcast %70 : vector<1x128xf32> to vector<72x128xf32>
    %72 = arith.addf %69, %71 : vector<72x128xf32>
    %73 = arith.addf %65, %72 : vector<72x128xf32>
    %cst_77 = arith.constant 0.000000e+00 : f32
    %74 = vector.broadcast %cst_77 : f32 to vector<72x128xf32>
    %75 = arith.maximumf %73, %74 : vector<72x128xf32>
    %c0_78 = arith.constant 0 : index
    %c0_79 = arith.constant 0 : index
    %c0_80 = arith.constant 0 : index
    %76 = vector.load %arg9[%c0_78, %c0_79, %c0_80] : memref<1x72x128xf32, #tpu.memory_space<vmem>>, vector<1x72x128xf32>
    %77 = vector.shape_cast %76 : vector<1x72x128xf32> to vector<72x128xf32>
    %78 = vector.shape_cast %75 : vector<72x128xf32> to vector<1x72x128xf32>
    tpu.vector_store %arg9[%c0_78, %c0_79, %c0_80], %78 {strides = array<i32>} : memref<1x72x128xf32, #tpu.memory_space<vmem>>, vector<1x72x128xf32>,
    return
  }
  func.func @transform_0(%arg0: i32) -> (i32, i32, i32, i32) {
    %c0_i32 = arith.constant 0 : i32
    %c0_i32_0 = arith.constant 0 : i32
    %c0_i32_1 = arith.constant 0 : i32
    %c0_i32_2 = arith.constant 0 : i32
    return %arg0, %c0_i32, %c0_i32_0, %c0_i32_1 : i32, i32, i32, i32
  }
  func.func @transform_1(%arg0: i32) -> (i32, i32, i32) {
    %c0_i32 = arith.constant 0 : i32
    %c0_i32_0 = arith.constant 0 : i32
    %c0_i32_1 = arith.constant 0 : i32
    return %arg0, %c0_i32, %c0_i32_0 : i32, i32, i32
  }
  func.func @transform_2(%arg0: i32) -> (i32, i32, i32) {
    %c0_i32 = arith.constant 0 : i32
    %c0_i32_0 = arith.constant 0 : i32
    %c0_i32_1 = arith.constant 0 : i32
    %c0_i32_2 = arith.constant 0 : i32
    return %c0_i32, %c0_i32_0, %c0_i32_1 : i32, i32, i32
  }
  func.func @transform_3(%arg0: i32) -> (i32, i32) {
    %c0_i32 = arith.constant 0 : i32
    %c0_i32_0 = arith.constant 0 : i32
    %c0_i32_1 = arith.constant 0 : i32
    return %c0_i32, %c0_i32_0 : i32, i32
  }
  func.func @transform_4(%arg0: i32) -> (i32, i32) {
    %c0_i32 = arith.constant 0 : i32
    %c0_i32_0 = arith.constant 0 : i32
    %c0_i32_1 = arith.constant 0 : i32
    return %c0_i32, %c0_i32_0 : i32, i32
  }
  func.func @transform_5(%arg0: i32) -> (i32, i32) {
    %c0_i32 = arith.constant 0 : i32
    %c0_i32_0 = arith.constant 0 : i32
    %c0_i32_1 = arith.constant 0 : i32
    return %c0_i32, %c0_i32_0 : i32, i32
  }
  func.func @transform_6(%arg0: i32) -> (i32, i32) {
    %c0_i32 = arith.constant 0 : i32
    %c0_i32_0 = arith.constant 0 : i32
    %c0_i32_1 = arith.constant 0 : i32
    return %c0_i32, %c0_i32_0 : i32, i32
  }
  func.func @transform_7(%arg0: i32) -> (i32, i32) {
    %c0_i32 = arith.constant 0 : i32
    %c0_i32_0 = arith.constant 0 : i32
    %c0_i32_1 = arith.constant 0 : i32
    return %c0_i32, %c0_i32_0 : i32, i32
  }
  func.func @transform_8(%arg0: i32) -> (i32, i32, i32) {
    %c0_i32 = arith.constant 0 : i32
    %c0_i32_0 = arith.constant 0 : i32
    %c0_i32_1 = arith.constant 0 : i32
    return %arg0, %c0_i32, %c0_i32_0 : i32, i32, i32
  }
}

</mosaic_0001>

<bundles_post_ra>
// kernel: bottleneck_forward.2
= control target key start
LH: loop header
LB: loop body
LE: loop exit
PB: predicated region body
PF: predicated region fallthrough
CT: control target
= control target key end

     0   :  { %s898_s12 = smov 0   ;;  %s1019_s0 = inlined_call_operand.vmem [shape: bf16[512,128], index: 0, kind: input, shape index: {}]   ;;  %s1020_s1 = inlined_call_operand.vmem [shape: bf16[128,128], index: 1, kind: input, shape index: {}]   ;;  %s1021_s2 = inlined_call_operand.vmem [shape: f32[1,128], index: 2, kind: input, shape index: {}]   ;;  %s1022_s3 = inlined_call_operand.vmem [shape: bf16[512,128], index: 3, kind: output, shape index: {}]  }
   0x1 LB: > { %s611_s13 = sadd.s32 4294967295, %s876_s12   ;;  %p615_p0 = scmp.ge.s32.totalorder %s876_s12, 1  ;;  %s876_s12 = sphi %s898_s12, %s13_s12  }
   0x2   : > { %p138_p1 = scmp.lt.s32.totalorder %s876_s12, 3 }
   0x4   : > { %p139_p2 = pnand %p615_p0, %p138_p1 }
   0x5   : > { %s616_s22 = sshll.u32 (!%p139_p2), %s611_s13, 5 }
   0x6   : > { %142 = sbr.rel (%p139_p2) target bundleno = 240 (0xf0), region = 32  ;;  %p163_p3 = scmp.lt.s32.totalorder (!%p139_p2), %s616_s22, 63 }
   0xb   : > { %v741_v0 = vld [vmem:[%s1020_s1 + $0x38] sm:$0xff]  ;;  %v740_v1 = vld [vmem:[%s1020_s1 + $0x30] sm:$0xff]  ;;  %v739_v2 = vld [vmem:[%s1020_s1 + $0x28] sm:$0xff]  ;;  %s1024_s22 = smov (!%p163_p3, %s616_s22), 63 }
   0xc   : > { %370 = vmatpush.bf16.msra.mxu0 %v741_v0  ;;  %837 = vmatpush.bf16.msra.mxu1 %v741_v0  ;;  %v738_v3 = vld [vmem:[%s1020_s1 + $0x20] sm:$0xff]  ;;  %v737_v4 = vld [vmem:[%s1020_s1 + $0x18] sm:$0xff]  ;;  %v736_v5 = vld [vmem:[%s1020_s1 + $0x10] sm:$0xff]  ;;  %s617_s29 = sshll.u32 %s1024_s22, 2 }
   0xd   : > { %838 = vmatpush.bf16.msra.mxu2 %v741_v0  ;;  %839 = vmatpush.bf16.msra.mxu3 %v741_v0  ;;  %v735_v6 = vld [vmem:[%s1020_s1 + $0x8] sm:$0xff]  ;;  %v734_v7 = vld [vmem:[%s1020_s1] sm:$0xff]  ;;  %s938_s7 = scalar_lea.vmem %s1019_s0, %s617_s29  ;;  %s970_s13 = scalar_lea.vmem %s1022_s3, %s617_s29 }
   0xe   : > { %v718_v8 = vld [vmem:[%s938_s7] sm:$0xff]  ;;  %v719_v12 = vld [vmem:[%s938_s7 + $0x8] sm:$0xff]  ;;  %v720_v16 = vld [vmem:[%s938_s7 + $0x10] sm:$0xff] }
   0xf   : > { %v722_v9 = vld [vmem:[%s938_s7 + $0x20] sm:$0xff]  ;;  %v723_v13 = vld [vmem:[%s938_s7 + $0x28] sm:$0xff]  ;;  %v724_v17 = vld [vmem:[%s938_s7 + $0x30] sm:$0xff] }
  0x10   : > { %371 = vmatpush.bf16.msra.mxu0 %v740_v1  ;;  %840 = vmatpush.bf16.msra.mxu1 %v740_v1  ;;  %v726_v10 = vld [vmem:[%s938_s7 + $0x40] sm:$0xff]  ;;  %v727_v14 = vld [vmem:[%s938_s7 + $0x48] sm:$0xff]  ;;  %v728_v18 = vld [vmem:[%s938_s7 + $0x50] sm:$0xff] }
  0x11   : > { %841 = vmatpush.bf16.msra.mxu2 %v740_v1  ;;  %842 = vmatpush.bf16.msra.mxu3 %v740_v1  ;;  %v730_v11 = vld [vmem:[%s938_s7 + $0x60] sm:$0xff]  ;;  %v731_v15 = vld [vmem:[%s938_s7 + $0x68] sm:$0xff]  ;;  %v732_v19 = vld [vmem:[%s938_s7 + $0x70] sm:$0xff] }
  0x12   : > { %v721_v20 = vld [vmem:[%s938_s7 + $0x18] sm:$0xff]  ;;  %v959_v26 = vld [vmem:[%s1021_s2] ss:$0 sm:$0xff] }
  0x13   : > { %v725_v21 = vld [vmem:[%s938_s7 + $0x38] sm:$0xff] }
  0x14   : > { %372 = vmatpush.bf16.msra.mxu0 %v739_v2  ;;  %843 = vmatpush.bf16.msra.mxu1 %v739_v2  ;;  %v729_v22 = vld [vmem:[%s938_s7 + $0x58] sm:$0xff] }
  0x15   : > { %844 = vmatpush.bf16.msra.mxu2 %v739_v2  ;;  %845 = vmatpush.bf16.msra.mxu3 %v739_v2  ;;  %v733_v23 = vld [vmem:[%s938_s7 + $0x78] sm:$0xff] }
  0x18   : > { %373 = vmatpush.bf16.msra.mxu0 %v738_v3  ;;  %846 = vmatpush.bf16.msra.mxu1 %v738_v3 }
  0x19   : > { %847 = vmatpush.bf16.msra.mxu2 %v738_v3  ;;  %848 = vmatpush.bf16.msra.mxu3 %v738_v3 }
  0x1c   : > { %374 = vmatpush.bf16.msra.mxu0 %v737_v4  ;;  %849 = vmatpush.bf16.msra.mxu1 %v737_v4 }
  0x1d   : > { %850 = vmatpush.bf16.msra.mxu2 %v737_v4  ;;  %851 = vmatpush.bf16.msra.mxu3 %v737_v4 }
  0x20   : > { %375 = vmatpush.bf16.msra.mxu0 %v736_v5  ;;  %852 = vmatpush.bf16.msra.mxu1 %v736_v5 }
  0x21   : > { %853 = vmatpush.bf16.msra.mxu2 %v736_v5  ;;  %854 = vmatpush.bf16.msra.mxu3 %v736_v5 }
  0x24   : > { %376 = vmatpush.bf16.msra.mxu0 %v735_v6  ;;  %855 = vmatpush.bf16.msra.mxu1 %v735_v6 }
  0x25   : > { %856 = vmatpush.bf16.msra.mxu2 %v735_v6  ;;  %857 = vmatpush.bf16.msra.mxu3 %v735_v6 }
  0x28   : > { %377 = vmatpush.bf16.msra.mxu0 %v734_v7  ;;  %858 = vmatpush.bf16.msra.mxu1 %v734_v7 }
  0x29   : > { %859 = vmatpush.bf16.msra.mxu2 %v734_v7  ;;  %860 = vmatpush.bf16.msra.mxu3 %v734_v7 }
  0x2b   : > { %378 = vmatmul.bf16.vlgmr.msra.gmra.mxu0 %v718_v8  ;;  %398 = vmatmul.bf16.vlgmr.msra.gmra.mxu1 %v722_v9 }
  0x2c   : > { %418 = vmatmul.bf16.vlgmr.msra.gmra.mxu2 %v726_v10  ;;  %438 = vmatmul.bf16.vlgmr.msra.gmra.mxu3 %v730_v11 }
  0x3b   : > { %383 = vmatmul.bf16.gmra.mxu0 %v719_v12  ;;  %403 = vmatmul.bf16.gmra.mxu1 %v723_v13 }
  0x3c   : > { %423 = vmatmul.bf16.gmra.mxu2 %v727_v14  ;;  %443 = vmatmul.bf16.gmra.mxu3 %v731_v15 }
  0x4b   : > { %388 = vmatmul.bf16.gmra.mxu0 %v720_v16  ;;  %408 = vmatmul.bf16.gmra.mxu1 %v724_v17 }
  0x4c   : > { %428 = vmatmul.bf16.gmra.mxu2 %v728_v18  ;;  %448 = vmatmul.bf16.gmra.mxu3 %v732_v19 }
  0x5b   : > { %393 = vmatmul.bf16.gmra.mxu0 %v721_v20  ;;  %413 = vmatmul.bf16.gmra.mxu1 %v725_v21 }
  0x5c   : > { %433 = vmatmul.bf16.gmra.mxu2 %v729_v22  ;;  %453 = vmatmul.bf16.gmra.mxu3 %v733_v23 }
  0xa8   : > { %v379_v24 = vpop.f32.mrf.mxu0  ;;  %v399_v25 = vpop.f32.mrf.mxu1 }
  0xa9   : > { %v380_v27 = vadd.f32 %v959_v26, %v379_v24  ;;  %v400_v28 = vadd.f32 %v959_v26, %v399_v25 }
  0xab   : > { %v459_v35 = vmax.f32 %v380_v27, 0.0  ;;  %v467_v36 = vmax.f32 %v400_v28, 0.0 }
  0xaf   : > { %v419_v29 = vpop.f32.mrf.mxu2  ;;  %v439_v30 = vpop.f32.mrf.mxu3 }
  0xb0   : > { %v381_v31 = vpop.f32.mrf.mxu0  ;;  %v401_v32 = vpop.f32.mrf.mxu1  ;;  %v420_v41 = vadd.f32 %v959_v26, %v419_v29  ;;  %v440_v42 = vadd.f32 %v959_v26, %v439_v30 }
  0xb1   : > { %v382_v33 = vadd.f32 %v959_v26, %v381_v31  ;;  %v402_v34 = vadd.f32 %v959_v26, %v401_v32 }
  0xb2   : > { %v475_v49 = vmax.f32 %v420_v41, 0.0  ;;  %v483_v50 = vmax.f32 %v440_v42, 0.0 }
  0xb3   : > { %v460_v37 = vmax.f32 %v382_v33, 0.0  ;;  %v468_v38 = vmax.f32 %v402_v34, 0.0 }
  0xb5   : > { %v745_v39 = vpack.c.bf16 %v460_v37, %v459_v35  ;;  %v765_v40 = vpack.c.bf16 %v468_v38, %v467_v36 }
  0xb7   : > { %746 = vst [vmem:[%s970_s13] sm:$0xff] %v745_v39   ;;  %v421_v43 = vpop.f32.mrf.mxu2  ;;  %v441_v44 = vpop.f32.mrf.mxu3 }
  0xb8   : > { %825 = vst [vmem:[%s970_s13 + $0x20] sm:$0xff] %v765_v40   ;;  %v422_v45 = vadd.f32 %v959_v26, %v421_v43  ;;  %v442_v46 = vadd.f32 %v959_v26, %v441_v44  ;;  %v384_v47 = vpop.f32.mrf.mxu0  ;;  %v404_v48 = vpop.f32.mrf.mxu1 }
  0xb9   : > { %v385_v55 = vadd.f32 %v959_v26, %v384_v47  ;;  %v405_v56 = vadd.f32 %v959_v26, %v404_v48 }
  0xba   : > { %v476_v51 = vmax.f32 %v422_v45, 0.0  ;;  %v484_v52 = vmax.f32 %v442_v46, 0.0 }
  0xbb   : > { %v461_v63 = vmax.f32 %v385_v55, 0.0  ;;  %v469_v0 = vmax.f32 %v405_v56, 0.0 }
  0xbc   : > { %v785_v53 = vpack.c.bf16 %v476_v51, %v475_v49  ;;  %v805_v54 = vpack.c.bf16 %v484_v52, %v483_v50 }
  0xbe   : > { %829 = vst [vmem:[%s970_s13 + $0x40] sm:$0xff] %v785_v53  }
  0xbf   : > { %833 = vst [vmem:[%s970_s13 + $0x60] sm:$0xff] %v805_v54   ;;  %v424_v57 = vpop.f32.mrf.mxu2  ;;  %v444_v58 = vpop.f32.mrf.mxu3 }
  0xc0   : > { %v386_v59 = vpop.f32.mrf.mxu0  ;;  %v406_v60 = vpop.f32.mrf.mxu1  ;;  %v425_v5 = vadd.f32 %v959_v26, %v424_v57  ;;  %v445_v6 = vadd.f32 %v959_v26, %v444_v58 }
  0xc1   : > { %v387_v61 = vadd.f32 %v959_v26, %v386_v59  ;;  %v407_v62 = vadd.f32 %v959_v26, %v406_v60 }
  0xc2   : > { %v477_v13 = vmax.f32 %v425_v5, 0.0  ;;  %v485_v14 = vmax.f32 %v445_v6, 0.0 }
  0xc3   : > { %v462_v1 = vmax.f32 %v387_v61, 0.0  ;;  %v470_v2 = vmax.f32 %v407_v62, 0.0 }
  0xc5   : > { %v750_v3 = vpack.c.bf16 %v462_v1, %v461_v63  ;;  %v770_v4 = vpack.c.bf16 %v470_v2, %v469_v0 }
  0xc7   : > { %822 = vst [vmem:[%s970_s13 + $0x8] sm:$0xff] %v750_v3   ;;  %v426_v7 = vpop.f32.mrf.mxu2  ;;  %v446_v8 = vpop.f32.mrf.mxu3 }
  0xc8   : > { %826 = vst [vmem:[%s970_s13 + $0x28] sm:$0xff] %v770_v4   ;;  %v427_v9 = vadd.f32 %v959_v26, %v426_v7  ;;  %v447_v10 = vadd.f32 %v959_v26, %v446_v8  ;;  %v389_v11 = vpop.f32.mrf.mxu0  ;;  %v409_v12 = vpop.f32.mrf.mxu1 }
  0xc9   : > { %v390_v19 = vadd.f32 %v959_v26, %v389_v11  ;;  %v410_v20 = vadd.f32 %v959_v26, %v409_v12 }
  0xca   : > { %v478_v15 = vmax.f32 %v427_v9, 0.0  ;;  %v486_v16 = vmax.f32 %v447_v10, 0.0 }
  0xcb   : > { %v463_v28 = vmax.f32 %v390_v19, 0.0  ;;  %v471_v29 = vmax.f32 %v410_v20, 0.0 }
  0xcc   : > { %v790_v17 = vpack.c.bf16 %v478_v15, %v477_v13  ;;  %v810_v18 = vpack.c.bf16 %v486_v16, %v485_v14 }
  0xce   : > { %830 = vst [vmem:[%s970_s13 + $0x48] sm:$0xff] %v790_v17  }
  0xcf   : > { %834 = vst [vmem:[%s970_s13 + $0x68] sm:$0xff] %v810_v18   ;;  %v429_v21 = vpop.f32.mrf.mxu2  ;;  %v449_v22 = vpop.f32.mrf.mxu3 }
  0xd0   : > { %v391_v23 = vpop.f32.mrf.mxu0  ;;  %v411_v24 = vpop.f32.mrf.mxu1  ;;  %v430_v34 = vadd.f32 %v959_v26, %v429_v21  ;;  %v450_v35 = vadd.f32 %v959_v26, %v449_v22 }
  0xd1   : > { %v392_v25 = vadd.f32 %v959_v26, %v391_v23  ;;  %v412_v27 = vadd.f32 %v959_v26, %v411_v24 }
  0xd2   : > { %v479_v42 = vmax.f32 %v430_v34, 0.0  ;;  %v487_v43 = vmax.f32 %v450_v35, 0.0 }
  0xd3   : > { %v464_v30 = vmax.f32 %v392_v25, 0.0  ;;  %v472_v31 = vmax.f32 %v412_v27, 0.0 }
  0xd5   : > { %v755_v32 = vpack.c.bf16 %v464_v30, %v463_v28  ;;  %v775_v33 = vpack.c.bf16 %v472_v31, %v471_v29 }
  0xd7   : > { %823 = vst [vmem:[%s970_s13 + $0x10] sm:$0xff] %v755_v32   ;;  %v431_v36 = vpop.f32.mrf.mxu2  ;;  %v451_v37 = vpop.f32.mrf.mxu3 }
  0xd8   : > { %827 = vst [vmem:[%s970_s13 + $0x30] sm:$0xff] %v775_v33   ;;  %v432_v38 = vadd.f32 %v959_v26, %v431_v36  ;;  %v452_v39 = vadd.f32 %v959_v26, %v451_v37  ;;  %v394_v40 = vpop.f32.mrf.mxu0  ;;  %v414_v41 = vpop.f32.mrf.mxu1 }
  0xd9   : > { %v395_v48 = vadd.f32 %v959_v26, %v394_v40  ;;  %v415_v49 = vadd.f32 %v959_v26, %v414_v41 }
  0xda   : > { %v480_v44 = vmax.f32 %v432_v38, 0.0  ;;  %v488_v45 = vmax.f32 %v452_v39, 0.0 }
  0xdb   : > { %v465_v56 = vmax.f32 %v395_v48, 0.0  ;;  %v473_v57 = vmax.f32 %v415_v49, 0.0 }
  0xdc   : > { %v795_v46 = vpack.c.bf16 %v480_v44, %v479_v42  ;;  %v815_v47 = vpack.c.bf16 %v488_v45, %v487_v43 }
  0xde   : > { %831 = vst [vmem:[%s970_s13 + $0x50] sm:$0xff] %v795_v46  }
  0xdf   : > { %835 = vst [vmem:[%s970_s13 + $0x70] sm:$0xff] %v815_v47   ;;  %v434_v50 = vpop.f32.mrf.mxu2  ;;  %v454_v51 = vpop.f32.mrf.mxu3 }
  0xe0   : > { %v396_v52 = vpop.f32.mrf.mxu0  ;;  %v416_v53 = vpop.f32.mrf.mxu1  ;;  %v435_v62 = vadd.f32 %v959_v26, %v434_v50  ;;  %v455_v63 = vadd.f32 %v959_v26, %v454_v51 }
  0xe1   : > { %v397_v54 = vadd.f32 %v959_v26, %v396_v52  ;;  %v417_v55 = vadd.f32 %v959_v26, %v416_v53 }
  0xe2   : > { %v481_v4 = vmax.f32 %v435_v62, 0.0  ;;  %v489_v5 = vmax.f32 %v455_v63, 0.0 }
  0xe3   : > { %v466_v58 = vmax.f32 %v397_v54, 0.0  ;;  %v474_v59 = vmax.f32 %v417_v55, 0.0 }
  0xe5   : > { %v760_v60 = vpack.c.bf16 %v466_v58, %v465_v56  ;;  %v780_v61 = vpack.c.bf16 %v474_v59, %v473_v57 }
  0xe7   : > { %824 = vst [vmem:[%s970_s13 + $0x18] sm:$0xff] %v760_v60   ;;  %v436_v0 = vpop.f32.mrf.mxu2  ;;  %v456_v1 = vpop.f32.mrf.mxu3 }
  0xe8   : > { %828 = vst [vmem:[%s970_s13 + $0x38] sm:$0xff] %v780_v61   ;;  %v437_v2 = vadd.f32 %v959_v26, %v436_v0  ;;  %v457_v3 = vadd.f32 %v959_v26, %v456_v1 }
  0xea   : > { %v482_v6 = vmax.f32 %v437_v2, 0.0  ;;  %v490_v7 = vmax.f32 %v457_v3, 0.0 }
  0xec   : > { %v800_v8 = vpack.c.bf16 %v482_v6, %v481_v4  ;;  %v820_v9 = vpack.c.bf16 %v490_v7, %v489_v5 }
  0xee   : > { %832 = vst [vmem:[%s970_s13 + $0x58] sm:$0xff] %v800_v8  }
  0xef   : > { %836 = vst [vmem:[%s970_s13 + $0x78] sm:$0xff] %v820_v9  }
  0xf0 PF: > { %s13_s12 = sadd.s32 1, %s876_s12  }
  0xf1   : > { %p10_p4 = scmp.ge.s32.totalorder %s13_s12, 4  }
  0xf3   :  { %12 = sbr.rel (!%p10_p4) target bundleno = 1 (0x1), region = 62 }

// kernel: bottleneck_forward.3
= control target key start
LH: loop header
LB: loop body
LE: loop exit
PB: predicated region body
PF: predicated region fallthrough
CT: control target
= control target key end

     0   :  { %s3023_s27 = smov 0   ;;  %s3544_s0 = inlined_call_operand.vmem [shape: bf16[2,4,82,128], index: 0, kind: input, shape index: {}]   ;;  %s3545_s1 = inlined_call_operand.vmem [shape: bf16[2,72,128], index: 1, kind: input, shape index: {}]   ;;  %s3546_s2 = inlined_call_operand.vmem [shape: bf16[9,128,128], index: 2, kind: input, shape index: {}]   ;;  %s3547_s3 = inlined_call_operand.vmem [shape: f32[1,128], index: 3, kind: input, shape index: {}]   ;;  %s3548_s4 = inlined_call_operand.vmem [shape: bf16[128,128], index: 4, kind: input, shape index: {}]   ;;  %s3549_s5 = inlined_call_operand.vmem [shape: f32[1,128], index: 5, kind: input, shape index: {}]   ;;  %s3550_s6 = inlined_call_operand.vmem [shape: bf16[128,128], index: 6, kind: input, shape index: {}]   ;;  %s3551_s7 = inlined_call_operand.vmem [shape: f32[1,128], index: 7, kind: input, shape index: {}]   ;;  %s3552_s8 = inlined_call_operand.vmem [shape: f32[2,72,128], index: 8, kind: output, shape index: {}]  }
   0x1 LB: > { %s2117_s28 = sadd.s32 4294967295, %s2976_s27   ;;  %p2121_p0 = scmp.ge.s32.totalorder %s2976_s27, 1  ;;  %s2976_s27 = sphi %s3023_s27, %s18_s27  }
   0x2   : > { %p272_p1 = scmp.lt.s32.totalorder %s2976_s27, 3 }
   0x4   : > { %p273_p2 = pnand %p2121_p0, %p272_p1 }
   0x5   : > { %p311_p3 = scmp.lt.s32.totalorder (!%p273_p2), %s2117_s28, 1 }
   0x6   : > { %276 = sbr.rel (%p273_p2) target bundleno = 519 (0x207), region = 52 }
   0xb   : > { %v2833_v0 = vld [vmem:[%s3546_s2 + $0x78] sm:$0xff]  ;;  %v2832_v3 = vld [vmem:[%s3546_s2 + $0x70] sm:$0xff]  ;;  %s3554_s28 = smov (!%p311_p3, %s2117_s28), 1  ;;  %v2831_v6 = vld [vmem:[%s3546_s2 + $0x68] sm:$0xff]  ;;  %vm648_vm0 = vsmask.f32 7424 }
   0xc   : > { %v2821_v1 = vld [vmem:[%s3546_s2 + $0x38] sm:$0xff]  ;;  %2937 = vmatpush.bf16.msra.mxu3 %v2833_v0  ;;  %v2820_v4 = vld [vmem:[%s3546_s2 + $0x30] sm:$0xff]  ;;  %454 = vmatpush.bf16.msra.mxu0 %v2833_v0  ;;  %v2819_v7 = vld [vmem:[%s3546_s2 + $0x28] sm:$0xff]  ;;  %s2953_s25 = smul.u32 176, %s3554_s28  ;;  %vm1652_vm1 = vcmask 1046528  }
   0xd   : > { %v2846_v2 = vld [vmem:[%s3546_s2 + $0xb8] sm:$0xff]  ;;  %563 = vmatpush.bf16.msra.mxu1 %v2821_v1  ;;  %v2845_v5 = vld [vmem:[%s3546_s2 + $0xb0] sm:$0xff]  ;;  %v2844_v8 = vld [vmem:[%s3546_s2 + $0xa8] sm:$0xff]  ;;  %s2954_s24 = smul.u32 36, %s3554_s28 }
   0xe   : > { %741 = vmatpush.bf16.msra.mxu2 %v2846_v2  ;;  %v2830_v9 = vld [vmem:[%s3546_s2 + $0x60] sm:$0xff]  ;;  %s3073_s14 = scalar_lea.vmem %s3544_s0, %s2953_s25  ;;  %v2829_v12 = vld [vmem:[%s3546_s2 + $0x58] sm:$0xff]  ;;  %v2828_v16 = vld [vmem:[%s3546_s2 + $0x50] sm:$0xff]  ;;  %s2955_s23 = smul.u32 72, %s3554_s28 }
   0xf   : > { %v2818_v10 = vld [vmem:[%s3546_s2 + $0x20] sm:$0xff]  ;;  %v2817_v13 = vld [vmem:[%s3546_s2 + $0x18] sm:$0xff]  ;;  %v2816_v17 = vld [vmem:[%s3546_s2 + $0x10] sm:$0xff]  ;;  %s3449_s9 = scalar_lea.vmem %s3545_s1, %s2954_s24 }
  0x10   : > { %2938 = vmatpush.bf16.msra.mxu3 %v2832_v3  ;;  %455 = vmatpush.bf16.msra.mxu0 %v2832_v3  ;;  %v2843_v11 = vld [vmem:[%s3546_s2 + $0xa0] sm:$0xff]  ;;  %v2842_v14 = vld [vmem:[%s3546_s2 + $0x98] sm:$0xff]  ;;  %v2841_v18 = vld [vmem:[%s3546_s2 + $0x90] sm:$0xff]  ;;  %s3530_s25 = scalar_lea.vmem %s3552_s8, %s2955_s23 }
  0x11   : > { %564 = vmatpush.bf16.msra.mxu1 %v2820_v4  ;;  %v2834_v15 = vld [vmem:[%s3073_s14] sm:$0xff]  ;;  %v2835_v19 = vld [vmem:[%s3073_s14 + $0x8] sm:$0xff]  ;;  %v2858_v32 = vld [vmem:[%s3546_s2 + $0xf8] sm:$0xff] }
  0x12   : > { %742 = vmatpush.bf16.msra.mxu2 %v2845_v5  ;;  %v652_v20 = vshll.u32 %v2834_v15, 16  ;;  %v2827_v21 = vld [vmem:[%s3546_s2 + $0x48] sm:$0xff]  ;;  %v650_v24 = vshrl.u32 %v2834_v15, 16  ;;  %v657_v26 = vshll.u32 %v2835_v19, 16  ;;  %v2826_v27 = vld [vmem:[%s3546_s2 + $0x40] sm:$0xff]  ;;  %v2870_v35 = vld [vmem:[%s3546_s2 + $0x138] sm:$0xff] }
  0x13   : > { %v2815_v22 = vld [vmem:[%s3546_s2 + $0x8] sm:$0xff]  ;;  %v2814_v28 = vld [vmem:[%s3546_s2] sm:$0xff]  ;;  %v2857_v37 = vld [vmem:[%s3546_s2 + $0xf0] sm:$0xff]  ;;  %v661_v44 = vshrl.u32 %v2835_v19, 16 }
  0x14   : > { %2939 = vmatpush.bf16.msra.mxu3 %v2831_v6  ;;  %456 = vmatpush.bf16.msra.mxu0 %v2831_v6  ;;  %v2840_v23 = vld [vmem:[%s3546_s2 + $0x88] sm:$0xff]  ;;  %v654_v25 = vrot.slane %v652_v20, 1  ;;  %v2839_v29 = vld [vmem:[%s3546_s2 + $0x80] sm:$0xff]  ;;  %v659_v31 = vrot.slane %v657_v26, 1  ;;  %v2869_v39 = vld [vmem:[%s3546_s2 + $0x130] sm:$0xff] }
  0x15   : > { %565 = vmatpush.bf16.msra.mxu1 %v2819_v7  ;;  %v2824_v33 = vld [vmem:[%s3073_s14 + $0x3c] sm:$0xff]  ;;  %v2822_v38 = vld [vmem:[%s3073_s14 + $0x2c] sm:$0xff]  ;;  %v2825_v51 = vld [vmem:[%s3073_s14 + $0x44] sm:$0xff] }
  0x16   : > { %743 = vmatpush.bf16.msra.mxu2 %v2844_v8  ;;  %v655_v30 = vor.u32 %v654_v25, %v650_v24  ;;  %v2810_v34 = vld [vmem:[%s3073_s14] sm:$0xff]  ;;  %v2856_v40 = vld [vmem:[%s3546_s2 + $0xe8] sm:$0xff]  ;;  %v2836_v41 = vld [vmem:[%s3073_s14 + $0x10] sm:$0xff]  ;;  %v663_v48 = vor.u32 %v661_v44, %v659_v31 }
  0x17   : > { %v2895_v42 = vld [vmem:[%s3546_s2 + $0x1b8] sm:$0xff]  ;;  %v2868_v43 = vld [vmem:[%s3546_s2 + $0x128] sm:$0xff]  ;;  %v665_v45 = vshll.u32 %v2836_v41, 16  ;;  %v2855_v46 = vld [vmem:[%s3546_s2 + $0xe0] sm:$0xff]  ;;  %v669_v2 = vshrl.u32 %v2836_v41, 16 }
  0x18   : > { %2940 = vmatpush.bf16.msra.mxu3 %v2830_v9  ;;  %457 = vmatpush.bf16.msra.mxu0 %v2830_v9  ;;  %v660_v36 = vsel %vm648_vm0, %v655_v30, %v659_v31  ;;  %v2867_v47 = vld [vmem:[%s3546_s2 + $0x120] sm:$0xff]  ;;  %v2854_v50 = vld [vmem:[%s3546_s2 + $0xd8] sm:$0xff]  ;;  %v2811_v52 = vld [vmem:[%s3073_s14 + $0x8] sm:$0xff] }
  0x19   : > { %566 = vmatpush.bf16.msra.mxu1 %v2818_v10  ;;  %v667_v49 = vrot.slane %v665_v45, 1  ;;  %v2866_v53 = vld [vmem:[%s3546_s2 + $0x118] sm:$0xff]  ;;  %v2853_v55 = vld [vmem:[%s3546_s2 + $0xd0] sm:$0xff]  ;;  %v2852_v61 = vld [vmem:[%s3546_s2 + $0xc8] sm:$0xff] }
  0x1a   : > { %744 = vmatpush.bf16.msra.mxu2 %v2843_v11  ;;  %v2823_v56 = vld [vmem:[%s3073_s14 + $0x34] sm:$0xff]  ;;  %v2893_v63 = vld [vmem:[%s3546_s2 + $0x1a8] sm:$0xff]  ;;  %v2851_v4 = vld [vmem:[%s3546_s2 + $0xc0] sm:$0xff] }
  0x1b   : > { %v668_v54 = vsel %vm648_vm0, %v663_v48, %v667_v49  ;;  %v2883_v57 = vld [vmem:[%s3546_s2 + $0x178] sm:$0xff]  ;;  %v2865_v58 = vld [vmem:[%s3546_s2 + $0x110] sm:$0xff]  ;;  %v2133_v0 = vld [vmem:[%s3073_s14 + $0x4c] sm:$0xf]  ;;  %v671_v10 = vor.u32 %v669_v2, %v667_v49 }
  0x1c   : > { %2941 = vmatpush.bf16.msra.mxu3 %v2829_v12  ;;  %458 = vmatpush.bf16.msra.mxu0 %v2829_v12  ;;  %v2894_v59 = vld [vmem:[%s3546_s2 + $0x1b0] sm:$0xff]  ;;  %v3168_v60 = vld [vmem:[%s3073_s14 + $0x18] sm:$0xff]  ;;  %v2864_v1 = vld [vmem:[%s3546_s2 + $0x108] sm:$0xff]  ;;  %v395_v7 = vunpack.c.l.b16 %v2133_v0 }
  0x1d   : > { %567 = vmatpush.bf16.msra.mxu1 %v2817_v13  ;;  %v2882_v62 = vld [vmem:[%s3546_s2 + $0x170] sm:$0xff]  ;;  %v673_v3 = vshll.u32 %v3168_v60, 16  ;;  %v2908_v5 = vld [vmem:[%s3546_s2 + $0x1f8] sm:$0xff]  ;;  %v2881_v6 = vld [vmem:[%s3546_s2 + $0x168] sm:$0xff]  ;;  %v677_v30 = vshrl.u32 %v3168_v60, 16 }
  0x1e   : > { %745 = vmatpush.bf16.msra.mxu2 %v2842_v14  ;;  %v2892_v8 = vld [vmem:[%s3546_s2 + $0x1a0] sm:$0xff]  ;;  %v2916_v12 = vld [vmem:[%s3546_s2 + $0x238] sm:$0xff]  ;;  %v2907_v13 = vld [vmem:[%s3546_s2 + $0x1f0] sm:$0xff]  ;;  %v400_v15 = vpack.c.b16 %v395_v7, %v395_v7 }
  0x1f   : > { %v2863_v9 = vld [vmem:[%s3546_s2 + $0x100] sm:$0xff]  ;;  %v675_v11 = vrot.slane %v673_v3, 1  ;;  %v2906_v24 = vld [vmem:[%s3546_s2 + $0x1e8] sm:$0xff]  ;;  %v2890_v26 = vld [vmem:[%s3546_s2 + $0x190] sm:$0xff] }
  0x20   : > { %2942 = vmatpush.bf16.msra.mxu3 %v2828_v16  ;;  %459 = vmatpush.bf16.msra.mxu0 %v2828_v16  ;;  %v2880_v14 = vld [vmem:[%s3546_s2 + $0x160] sm:$0xff]  ;;  %v2812_v16 = vld [vmem:[%s3073_s14 + $0x10] sm:$0xff] }
  0x21   : > { %568 = vmatpush.bf16.msra.mxu1 %v2816_v17  ;;  %v676_v17 = vsel %vm648_vm0, %v671_v10, %v675_v11  ;;  %v2280_v19 = vld [vmem:[%s3073_s14 + $0x20] sm:$0xf]  ;;  %v2838_v20 = vld [vmem:[%s3073_s14 + $0x20] sm:$0x10]  ;;  %v2860_v41 = vld [vmem:[%s3073_s14 + $0x8c] sm:$0xff] }
  0x22   : > { %746 = vmatpush.bf16.msra.mxu2 %v2841_v18  ;;  %v2859_v18 = vld [vmem:[%s3073_s14 + $0x84] sm:$0xff]  ;;  %v2281_v25 = vor.u32 %v2838_v20, %v2280_v19  ;;  %v334_v44 = vld [vmem:[%s3073_s14 + $0x20] sm:$0xf]  ;;  %v2911_v60 = vld [vmem:[%s3546_s2 + $0x210] sm:$0xff] }
  0x23   : > { %v1259_v45 = vld [vmem:[%s3073_s14 + $0x4] sm:$0xff]  }
  0x24   : > { %2943 = vmatpush.bf16.msra.mxu3 %v2827_v21  ;;  %460 = vmatpush.bf16.msra.mxu0 %v2827_v21  ;;  %v2879_v21 = vld [vmem:[%s3546_s2 + $0x158] sm:$0xff]  ;;  %v681_v31 = vshll.u32 %v2281_v25, 16  ;;  %v685_v48 = vshrl.u32 %v2281_v25, 16  ;;  %v2395_v20 = vld [vmem:[%s3073_s14 + $0xa4] sm:$0xf] }
  0x25   : > { %569 = vmatpush.bf16.msra.mxu1 %v2815_v22  ;;  %v2891_v22 = vld [vmem:[%s3546_s2 + $0x198] sm:$0xff]  ;;  %v972_v25 = vunpack.c.l.b16 %v2395_v20 }
  0x26   : > { %747 = vmatpush.bf16.msra.mxu2 %v2840_v23  ;;  %v2915_v23 = vld [vmem:[%s3546_s2 + $0x230] sm:$0xff] }
  0x28   : > { %2944 = vmatpush.bf16.msra.mxu3 %v2826_v27  ;;  %461 = vmatpush.bf16.msra.mxu0 %v2826_v27  ;;  %v2878_v27 = vld [vmem:[%s3546_s2 + $0x150] sm:$0xff] }
  0x29   : > { %570 = vmatpush.bf16.msra.mxu1 %v2814_v28  ;;  %v2914_v28 = vld [vmem:[%s3546_s2 + $0x228] sm:$0xff] }
  0x2a   : > { %748 = vmatpush.bf16.msra.mxu2 %v2839_v29  ;;  %v2905_v29 = vld [vmem:[%s3546_s2 + $0x1e0] sm:$0xff] }
  0x2b   : > { %472 = vmatmul.bf16.vlgmr.msra.gmra.mxu3 %v2824_v33  ;;  %462 = vmatmul.bf16.vlgmr.msra.gmra.mxu0 %v2822_v38  ;;  %v2877_v33 = vld [vmem:[%s3546_s2 + $0x148] sm:$0xff]  ;;  %v2813_v38 = vld [vmem:[%s3073_s14 + $0x18] sm:$0xff] }
  0x2c   : > { %886 = vmatpush.bf16.msrb.mxu3 %v2858_v32  ;;  %571 = vmatmul.bf16.vlgmr.msra.gmra.mxu1 %v2810_v34  ;;  %v2889_v32 = vld [vmem:[%s3546_s2 + $0x188] sm:$0xff]  ;;  %v679_v34 = vor.u32 %v677_v30, %v675_v11  ;;  %v2862_v11 = vld [vmem:[%s3073_s14 + $0x9c] sm:$0xff]  ;;  %v977_v30 = vpack.c.b16 %v972_v25, %v972_v25 }
  0x2d   : > { %749 = vmatmul.bf16.vlgmr.msra.gmra.mxu2 %v660_v36  ;;  %1031 = vmatpush.bf16.msrb.mxu0 %v2870_v35  ;;  %v683_v35 = vrot.slane %v681_v31, 1  ;;  %v2888_v36 = vld [vmem:[%s3546_s2 + $0x180] sm:$0xff] }
  0x2e   : > { %1403 = vmatpush.bf16.msrb.mxu2 %v2895_v42  ;;  %1217 = vmatpush.bf16.msrb.mxu1 %v2883_v57  ;;  %v2913_v42 = vld [vmem:[%s3546_s2 + $0x220] sm:$0xff]  ;;  %v2903_v57 = vld [vmem:[%s3546_s2 + $0x1d0] sm:$0xff] }
  0x2f   : > { %v2968_v31 = vld [vmem:[%s3073_s14 + $0x4] sm:$0xe] }
  0x30   : > { %887 = vmatpush.bf16.msrb.mxu3 %v2857_v37  ;;  %v2876_v37 = vld [vmem:[%s3546_s2 + $0x140] sm:$0xff] }
  0x31   : > { %1032 = vmatpush.bf16.msrb.mxu0 %v2869_v39  ;;  %v2847_v39 = vld [vmem:[%s3073_s14 + $0x58] sm:$0xff] }
  0x32   : > { %1404 = vmatpush.bf16.msrb.mxu2 %v2894_v59  ;;  %1218 = vmatpush.bf16.msrb.mxu1 %v2882_v62  ;;  %v1314_v59 = vshll.u32 %v1259_v45, 16 }
  0x34   : > { %888 = vmatpush.bf16.msrb.mxu3 %v2856_v40  ;;  %v684_v40 = vsel %vm648_vm0, %v679_v34, %v683_v35  ;;  %v1316_v2 = vrot.slane %v1314_v59, 1  ;;  %v2322_v34 = vld [vmem:[%s3073_s14 + $0x78] sm:$0xf] }
  0x35   : > { %1033 = vmatpush.bf16.msrb.mxu0 %v2868_v43  ;;  %v2904_v43 = vld [vmem:[%s3546_s2 + $0x1d8] sm:$0xff] }
  0x36   : > { %1405 = vmatpush.bf16.msrb.mxu2 %v2893_v63  ;;  %1219 = vmatpush.bf16.msrb.mxu1 %v2881_v6 }
  0x38   : > { %889 = vmatpush.bf16.msrb.mxu3 %v2855_v46  ;;  %v3263_v46 = vld [vmem:[%s3073_s14 + $0x4] sm:$0xf0] }
  0x39   : > { %1034 = vmatpush.bf16.msrb.mxu0 %v2867_v47  ;;  %v504_v47 = vunpack.c.l.b16 %v334_v44 }
  0x3a   : > { %1406 = vmatpush.bf16.msrb.mxu2 %v2892_v8  ;;  %1220 = vmatpush.bf16.msrb.mxu1 %v2880_v14  ;;  %v2849_v8 = vld [vmem:[%s3073_s14 + $0x68] sm:$0xff]  ;;  %v2901_v14 = vld [vmem:[%s3546_s2 + $0x1c0] sm:$0xff] }
  0x3b   : > { %477 = vmatmul.bf16.gmra.mxu3 %v2825_v51  ;;  %467 = vmatmul.bf16.gmra.mxu0 %v2823_v56  ;;  %v509_v49 = vpack.c.b16 %v504_v47, %v504_v47  ;;  %v687_v51 = vor.u32 %v685_v48, %v683_v35  ;;  %v2912_v56 = vld [vmem:[%s3546_s2 + $0x218] sm:$0xff] }
  0x3c   : > { %890 = vmatpush.bf16.msrb.mxu3 %v2854_v50  ;;  %576 = vmatmul.bf16.gmra.mxu1 %v2811_v52  ;;  %v2848_v50 = vld [vmem:[%s3073_s14 + $0x60] sm:$0xff]  ;;  %v2871_v52 = vld [vmem:[%s3073_s14 + $0x58] sm:$0xff] }
  0x3d   : > { %754 = vmatmul.bf16.gmra.mxu2 %v668_v54  ;;  %1035 = vmatpush.bf16.msrb.mxu0 %v2866_v53  ;;  %v2861_v53 = vld [vmem:[%s3073_s14 + $0x94] sm:$0xff]  ;;  %v2872_v54 = vld [vmem:[%s3073_s14 + $0x60] sm:$0xff]  ;;  %v1126_v62 = vshrl.u32 %v2871_v52, 16 }
  0x3e   : > { %1407 = vmatpush.bf16.msrb.mxu2 %v2891_v22  ;;  %1221 = vmatpush.bf16.msrb.mxu1 %v2879_v21  ;;  %v1133_v0 = vshll.u32 %v2872_v54, 16 }
  0x40   : > { %891 = vmatpush.bf16.msrb.mxu3 %v2853_v55  ;;  %v1128_v55 = vshll.u32 %v2871_v52, 16  ;;  %v2504_v52 = vld [vmem:[%s3073_s14 + $0x78] sm:$0xf] }
  0x41   : > { %1036 = vmatpush.bf16.msrb.mxu0 %v2865_v58  ;;  %v3276_v58 = vld [vmem:[%s3073_s14 + $0xc] sm:$0xff] }
  0x42   : > { %1408 = vmatpush.bf16.msrb.mxu2 %v2890_v26  ;;  %1222 = vmatpush.bf16.msrb.mxu1 %v2878_v27  ;;  %v1130_v63 = vrot.slane %v1128_v55, 1  ;;  %v1319_v3 = vshll.u32 %v3276_v58, 16  ;;  %v2850_v26 = vld [vmem:[%s3073_s14 + $0x70] sm:$0xff]  ;;  %v2909_v27 = vld [vmem:[%s3546_s2 + $0x200] sm:$0xff]  ;;  %v1654_v47 = vrot.slane %v3276_v58, 1 }
  0x44   : > { %892 = vmatpush.bf16.msrb.mxu3 %v2852_v61  ;;  %v2902_v61 = vld [vmem:[%s3546_s2 + $0x1c8] sm:$0xff]  ;;  %v1321_v7 = vrot.slane %v1319_v3, 1 }
  0x45   : > { %1037 = vmatpush.bf16.msrb.mxu0 %v2864_v1  ;;  %v1312_v1 = vshrl.u32 %v1259_v45, 16 }
  0x46   : > { %1409 = vmatpush.bf16.msrb.mxu2 %v2889_v32  ;;  %1223 = vmatpush.bf16.msrb.mxu1 %v2877_v33  ;;  %v2874_v32 = vld [vmem:[%s3073_s14 + $0x70] sm:$0xff]  ;;  %v3311_v33 = vld [vmem:[%s3073_s14 + $0x1c] sm:$0xff] }
  0x47   : > { %v1317_v6 = vor.u32 %v1316_v2, %v1312_v1  ;;  %v1339_v1 = vshrl.u32 %v3311_v33, 16 }
  0x48   : > { %893 = vmatpush.bf16.msrb.mxu3 %v2851_v4  ;;  %v1131_v4 = vor.u32 %v1130_v63, %v1126_v62 }
  0x49   : > { %1038 = vmatpush.bf16.msrb.mxu0 %v2863_v9  ;;  %v1322_v10 = vsel %vm648_vm0, %v1317_v6, %v1321_v7 }
  0x4a   : > { %1410 = vmatpush.bf16.msrb.mxu2 %v2888_v36  ;;  %1224 = vmatpush.bf16.msrb.mxu1 %v2876_v37  ;;  %v1149_v36 = vshll.u32 %v2874_v32, 16 }
  0x4b   : > { %482 = vmatmul.bf16.gmra.mxu3 %v400_v15  ;;  %v3297_v15 = vld [vmem:[%s3073_s14 + $0x14] sm:$0xff] }
  0x4c   : > { %1589 = vmatpush.bf16.msra.mxu3 %v2908_v5  ;;  %581 = vmatmul.bf16.gmra.mxu1 %v2812_v16  ;;  %v1135_v5 = vrot.slane %v1133_v0, 1  ;;  %v1137_v16 = vshrl.u32 %v2872_v54, 16  ;;  %v1327_v19 = vshll.u32 %v3297_v15, 16  ;;  %v1331_v37 = vshrl.u32 %v3297_v15, 16  ;;  %v2887_v54 = vld [vmem:[%s3073_s14 + $0x24] sm:$0x10] }
  0x4d   : > { %1715 = vmatpush.bf16.msra.mxu0 %v2916_v12  ;;  %759 = vmatmul.bf16.gmra.mxu2 %v676_v17  ;;  %v2873_v12 = vld [vmem:[%s3073_s14 + $0x68] sm:$0xff] }
  0x4e   : > { %1039 = vmatmul.bf16.vlgmr.msrb.gmra.mxu0 %v2859_v18  ;;  %v1136_v9 = vsel %vm648_vm0, %v1131_v4, %v1135_v5  ;;  %v1141_v17 = vshll.u32 %v2873_v12, 16  ;;  %v1323_v18 = vshrl.u32 %v3276_v58, 16  ;;  %v1139_v21 = vor.u32 %v1137_v16, %v1135_v5 }
  0x4f   : > { %v1145_v35 = vshrl.u32 %v2873_v12, 16 }
  0x50   : > { %1590 = vmatpush.bf16.msra.mxu3 %v2907_v13  ;;  %v2910_v13 = vld [vmem:[%s3546_s2 + $0x208] sm:$0xff]  ;;  %v1143_v22 = vrot.slane %v1141_v17, 1 }
  0x51   : > { %1716 = vmatpush.bf16.msra.mxu0 %v2915_v23  ;;  %v1325_v23 = vor.u32 %v1323_v18, %v1321_v7  ;;  %v2898_v18 = vld [vmem:[%s3073_s14 + $0x40] sm:$0xff] }
  0x54   : > { %1591 = vmatpush.bf16.msra.mxu3 %v2906_v24  ;;  %v1329_v24 = vrot.slane %v1327_v19, 1 }
  0x55   : > { %1717 = vmatpush.bf16.msra.mxu0 %v2914_v28  ;;  %v1144_v28 = vsel %vm648_vm0, %v1139_v21, %v1143_v22 }
  0x58   : > { %1592 = vmatpush.bf16.msra.mxu3 %v2905_v29  ;;  %v1330_v29 = vsel %vm648_vm0, %v1325_v23, %v1329_v24 }
  0x59   : > { %1718 = vmatpush.bf16.msra.mxu0 %v2913_v42  ;;  %v1151_v42 = vrot.slane %v1149_v36, 1 }
  0x5b   : > { %894 = vmatmul.bf16.vlgmr.msrb.gmra.mxu3 %v2847_v39  ;;  %v2969_v39 = vor.u32 %v2968_v31, %v3263_v46  ;;  %v2568_v46 = vld [vmem:[%s3073_s14 + $0x24] sm:$0xf] }
  0x5c   : > { %586 = vmatmul.bf16.gmra.mxu1 %v2813_v38  ;;  %1593 = vmatpush.bf16.msra.mxu3 %v2904_v43  ;;  %v1335_v38 = vshll.u32 %v3311_v33, 16  ;;  %v1333_v43 = vor.u32 %v1331_v37, %v1329_v24  ;;  %v3327_v58 = vor.u32 %v2887_v54, %v2568_v46 }
  0x5d   : > { %764 = vmatmul.bf16.gmra.mxu2 %v684_v40  ;;  %1719 = vmatpush.bf16.msra.mxu0 %v2912_v56  ;;  %v827_v40 = vunpack.c.l.b16 %v2322_v34  ;;  %v1653_v45 = vrot.slane %v2969_v39, 1 }
  0x5e   : > { %1044 = vmatmul.bf16.gmra.mxu0 %v2860_v41  ;;  %v1147_v41 = vor.u32 %v1145_v35, %v1143_v22  ;;  %v1337_v44 = vrot.slane %v1335_v38, 1  ;;  %v1343_v2 = vshll.u32 %v3327_v58, 16  ;;  %v1513_v22 = vshll.u32 %v2898_v18, 16 }
  0x5f   : > { %v832_v48 = vpack.c.b16 %v827_v40, %v827_v40  ;;  %v1655_v55 = vsel %vm1652_vm1, %v1653_v45, %v1654_v47  ;;  %v2899_v40 = vld [vmem:[%s3073_s14 + $0x48] sm:$0xff] }
  0x60   : > { %1594 = vmatpush.bf16.msra.mxu3 %v2903_v57  ;;  %v2897_v57 = vld [vmem:[%s3073_s14 + $0x38] sm:$0xff]  ;;  %v1341_v7 = vor.u32 %v1339_v1, %v1337_v44  ;;  %v1525_v1 = vshrl.u32 %v2899_v40, 16 }
  0x61   : > { %1720 = vmatpush.bf16.msra.mxu0 %v2911_v60  ;;  %v1153_v60 = vshrl.u32 %v2874_v32, 16  ;;  %v1505_v0 = vshll.u32 %v2897_v57, 16 }
  0x63   : > { %v1155_v3 = vor.u32 %v1153_v60, %v1151_v42  ;;  %v1507_v6 = vrot.slane %v1505_v0, 1  ;;  %v2936_v60 = vld [vmem:[%s3550_s6 + $0x38] sm:$0xff] }
  0x64   : > { %1595 = vmatpush.bf16.msra.mxu3 %v2902_v61  ;;  %1990 = vmatpush.bf16.msra.mxu2 %v2936_v60 }
  0x65   : > { %1721 = vmatpush.bf16.msra.mxu0 %v2910_v13 }
  0x68   : > { %1596 = vmatpush.bf16.msra.mxu3 %v2901_v14 }
  0x69   : > { %1722 = vmatpush.bf16.msra.mxu0 %v2909_v27 }
  0x6b   : > { %899 = vmatmul.bf16.gmra.mxu3 %v2848_v50  ;;  %v2896_v50 = vld [vmem:[%s3073_s14 + $0x30] sm:$0xff] }
  0x6c   : > { %591 = vmatmul.bf16.gmra.mxu1 %v509_v49  ;;  %v1152_v49 = vsel %vm648_vm0, %v1147_v41, %v1151_v42  ;;  %v1500_v59 = vshll.u32 %v2896_v50, 16  ;;  %v1498_v62 = vshrl.u32 %v2896_v50, 16 }
  0x6d   : > { %769 = vmatmul.bf16.gmra.mxu2 %v687_v51  ;;  %v1338_v51 = vsel %vm648_vm0, %v1333_v43, %v1337_v44  ;;  %v1517_v43 = vshrl.u32 %v2898_v18, 16  ;;  %v1521_v44 = vshll.u32 %v2899_v40, 16 }
  0x6e   : > { %1049 = vmatmul.bf16.gmra.mxu0 %v2861_v53  ;;  %v2875_v53 = vld [vmem:[%s3073_s14 + $0x78] sm:$0x10]  ;;  %v1502_v63 = vrot.slane %v1500_v59, 1 }
  0x6f   : > { %v2505_v56 = vor.u32 %v2875_v53, %v2504_v52 }
  0x70   : > { %v1503_v5 = vor.u32 %v1502_v63, %v1498_v62 }
  0x71   : > { %v1157_v61 = vshll.u32 %v2505_v56, 16  ;;  %v1161_v25 = vshrl.u32 %v2505_v56, 16  ;;  %v2900_v56 = vld [vmem:[%s3073_s14 + $0x50] sm:$0x10] }
  0x72   : > { %v1508_v12 = vsel %vm648_vm0, %v1503_v5, %v1507_v6 }
  0x73   : > { %v1159_v4 = vrot.slane %v1157_v61, 1 }
  0x75   : > { %v1163_v32 = vor.u32 %v1161_v25, %v1159_v4 }
  0x7b   : > { %904 = vmatmul.bf16.gmra.mxu3 %v2849_v8  ;;  %v1345_v8 = vrot.slane %v1343_v2, 1 }
  0x7c   : > { %1225 = vmatmul.bf16.vlgmr.msrb.gmra.mxu1 %v1136_v9  ;;  %v1656_v9 = vrot.slane %v3297_v15, 1  ;;  %v1509_v15 = vshrl.u32 %v2897_v57, 16 }
  0x7d   : > { %1411 = vmatmul.bf16.vlgmr.msrb.gmra.mxu2 %v1322_v10  ;;  %v1346_v13 = vsel %vm648_vm0, %v1341_v7, %v1345_v8 }
  0x7e   : > { %1054 = vmatmul.bf16.gmra.mxu0 %v2862_v11  ;;  %v1160_v11 = vsel %vm648_vm0, %v1155_v3, %v1159_v4  ;;  %v1657_v16 = vsel %vm1652_vm1, %v1654_v47, %v1656_v9  ;;  %v1511_v27 = vor.u32 %v1509_v15, %v1507_v6  ;;  %v2935_v3 = vld [vmem:[%s3550_s6 + $0x30] sm:$0xff] }
  0x7f   : > { %1991 = vmatpush.bf16.msra.mxu2 %v2935_v3 }
  0x8b   : > { %909 = vmatmul.bf16.gmra.mxu3 %v2850_v26  ;;  %v1347_v26 = vshrl.u32 %v3327_v58, 16 }
  0x8c   : > { %1230 = vmatmul.bf16.gmra.mxu1 %v1144_v28  ;;  %v1515_v28 = vrot.slane %v1513_v22, 1 }
  0x8d   : > { %1416 = vmatmul.bf16.gmra.mxu2 %v1330_v29  ;;  %v1349_v35 = vor.u32 %v1347_v26, %v1345_v8  ;;  %v2924_v26 = vld [vmem:[%s3548_s4 + $0x38] sm:$0xff] }
  0x8e   : > { %1059 = vmatmul.bf16.gmra.mxu0 %v977_v30  ;;  %v1658_v30 = vrot.slane %v3311_v33, 1  ;;  %v1516_v36 = vsel %vm648_vm0, %v1511_v27, %v1515_v28  ;;  %2945 = vmatpush.bf16.msra.mxu1 %v2924_v26 }
  0x8f   : > { %1852 = vmatpush.bf16.msrb.mxu0 %v2924_v26  ;;  %v2918_v26 = vld [vmem:[%s3548_s4 + $0x8] sm:$0xff] }
  0x90   : > { %v1659_v38 = vsel %vm1652_vm1, %v1656_v9, %v1658_v30 }
  0x9b   : > { %914 = vmatmul.bf16.gmra.mxu3 %v832_v48  ;;  %v1519_v48 = vor.u32 %v1517_v43, %v1515_v28 }
  0x9c   : > { %1235 = vmatmul.bf16.gmra.mxu1 %v1152_v49  ;;  %v1523_v49 = vrot.slane %v1521_v44, 1 }
  0x9d   : > { %1421 = vmatmul.bf16.gmra.mxu2 %v1338_v51  ;;  %v1660_v51 = vrot.slane %v3327_v58, 1 }
  0x9e   : > { %1723 = vmatmul.bf16.vlgmr.msra.gmra.mxu0 %v1655_v55  ;;  %v1524_v46 = vsel %vm648_vm0, %v1519_v48, %v1523_v49  ;;  %v2646_v55 = vld [vmem:[%s3073_s14 + $0x50] sm:$0xf]  ;;  %v1527_v6 = vor.u32 %v1525_v1, %v1523_v49  ;;  %v2932_v49 = vld [vmem:[%s3550_s6 + $0x18] sm:$0xff] }
  0x9f   : > { %v1661_v59 = vsel %vm1652_vm1, %v1658_v30, %v1660_v51  ;;  %v2647_v61 = vor.u32 %v2900_v56, %v2646_v55  ;;  %v2931_v55 = vld [vmem:[%s3550_s6 + $0x10] sm:$0xff] }
  0xa1   : > { %v1529_v2 = vshll.u32 %v2647_v61, 16 }
  0xa3   : > { %v1531_v7 = vrot.slane %v1529_v2, 1 }
  0xa8   : > { %v463_v14 = vpop.f32.mrf.mxu0 }
  0xa9   : > { %v572_v10 = vpop.f32.mrf.mxu1 }
  0xaa   : > { %v573_v17 = vadd.f32 %v572_v10, %v463_v14 }
  0xab   : > { %1597 = vmatmul.bf16.vlgmr.msra.gmra.mxu3 %v1508_v12 }
  0xac   : > { %1240 = vmatmul.bf16.gmra.mxu1 %v1160_v11  ;;  %v1532_v11 = vsel %vm648_vm0, %v1527_v6, %v1531_v7 }
  0xad   : > { %1426 = vmatmul.bf16.gmra.mxu2 %v1346_v13 }
  0xae   : > { %1728 = vmatmul.bf16.gmra.mxu0 %v1657_v16  ;;  %v473_v19 = vpop.f32.mrf.mxu3 }
  0xb0   : > { %v750_v20 = vpop.f32.mrf.mxu2  ;;  %v3341_v24 = vpop.f32.mrf.mxu0 }
  0xb1   : > { %v3337_v21 = vpop.f32.mrf.mxu1  ;;  %v3339_v23 = vadd.f32 %v750_v20, %v573_v17  ;;  %v2934_v20 = vld [vmem:[%s3550_s6 + $0x28] sm:$0xff] }
  0xb2   : > { %v575_v15 = vadd.f32 %v3337_v21, %v3341_v24  ;;  %1992 = vmatpush.bf16.msra.mxu2 %v2934_v20 }
  0xb6   : > { %v475_v29 = vpop.f32.mrf.mxu3 }
  0xb8   : > { %v3345_v31 = vpop.f32.mrf.mxu2  ;;  %v468_v37 = vpop.f32.mrf.mxu0 }
  0xb9   : > { %v577_v34 = vpop.f32.mrf.mxu1  ;;  %v775_v28 = vadd.f32 %v3345_v31, %v575_v15 }
  0xba   : > { %v578_v39 = vadd.f32 %v577_v34, %v468_v37  ;;  %v2933_v37 = vld [vmem:[%s3550_s6 + $0x20] sm:$0xff] }
  0xbb   : > { %1602 = vmatmul.bf16.gmra.mxu3 %v1516_v36  ;;  %1993 = vmatpush.bf16.msra.mxu2 %v2933_v37 }
  0xbc   : > { %1245 = vmatmul.bf16.gmra.mxu1 %v1163_v32 }
  0xbd   : > { %1431 = vmatmul.bf16.gmra.mxu2 %v1349_v35 }
  0xbe   : > { %1733 = vmatmul.bf16.gmra.mxu0 %v1659_v38  ;;  %v478_v41 = vpop.f32.mrf.mxu3  ;;  %v2923_v38 = vld [vmem:[%s3548_s4 + $0x30] sm:$0xff] }
  0xbf   : > { %2946 = vmatpush.bf16.msra.mxu1 %v2923_v38  ;;  %1853 = vmatpush.bf16.msrb.mxu0 %v2923_v38 }
  0xc0   : > { %v755_v33 = vpop.f32.mrf.mxu2  ;;  %v3354_v47 = vpop.f32.mrf.mxu0  ;;  %1994 = vmatpush.bf16.msra.mxu2 %v2932_v49  ;;  %v2927_v49 = vld [vmem:[%s3449_s9 + $0x10] sm:$0xff] }
  0xc1   : > { %v3350_v42 = vpop.f32.mrf.mxu1  ;;  %v3352_v45 = vadd.f32 %v755_v33, %v578_v39 }
  0xc2   : > { %v580_v44 = vadd.f32 %v3350_v42, %v3354_v47 }
  0xc4   : > { %1995 = vmatpush.bf16.msra.mxu2 %v2931_v55 }
  0xc6   : > { %v480_v50 = vpop.f32.mrf.mxu3 }
  0xc8   : > { %v3357_v52 = vpop.f32.mrf.mxu2 }
  0xc9   : > { %v582_v53 = vpop.f32.mrf.mxu1 }
  0xca   : > { %v583_v54 = vadd.f32 %v582_v53, %v473_v19 }
  0xcb   : > { %v1040_v57 = vpop.f32.mrf.mxu0  ;;  %1607 = vmatmul.bf16.gmra.mxu3 %v1524_v46 }
  0xce   : > { %1738 = vmatmul.bf16.gmra.mxu0 %v1661_v59  ;;  %v483_v58 = vpop.f32.mrf.mxu3 }
  0xd0   : > { %v760_v62 = vpop.f32.mrf.mxu2 }
  0xd1   : > { %v3366_v63 = vadd.f32 %v760_v62, %v583_v54  ;;  %v584_v0 = vpop.f32.mrf.mxu1 }
  0xd2   : > { %v3371_v4 = vadd.f32 %v584_v0, %v475_v29 }
  0xd3   : > { %v1042_v5 = vpop.f32.mrf.mxu0 }
  0xd6   : > { %v485_v8 = vpop.f32.mrf.mxu3 }
  0xd8   : > { %v3373_v9 = vpop.f32.mrf.mxu2 }
  0xd9   : > { %v587_v10 = vpop.f32.mrf.mxu1  ;;  %v779_v0 = vadd.f32 %v3373_v9, %v3371_v4 }
  0xda   : > { %v588_v12 = vadd.f32 %v587_v10, %v478_v41 }
  0xdb   : > { %v1045_v13 = vpop.f32.mrf.mxu0  ;;  %1612 = vmatmul.bf16.gmra.mxu3 %v1532_v11  ;;  %v2929_v11 = vld [vmem:[%s3550_s6] sm:$0xff] }
  0xde   : > { %1743 = vmatmul.bf16.gmra.mxu0 %v1660_v51  ;;  %v895_v14 = vpop.f32.mrf.mxu3 }
  0xdf   : > { %v919_v17 = vadd.f32 %v895_v14, %v3339_v23  ;;  %v1533_v23 = vshrl.u32 %v2647_v61, 16 }
  0xe0   : > { %v765_v16 = vpop.f32.mrf.mxu2 }
  0xe1   : > { %v3377_v18 = vadd.f32 %v765_v16, %v588_v12  ;;  %v589_v19 = vpop.f32.mrf.mxu1  ;;  %v3384_v25 = vadd.f32 %v1040_v57, %v919_v17  ;;  %v1535_v34 = vor.u32 %v1533_v23, %v1531_v7  ;;  %v2920_v7 = vld [vmem:[%s3548_s4 + $0x18] sm:$0xff]  ;;  %v2925_v16 = vld [vmem:[%s3449_s9] sm:$0xff]  ;;  %v2919_v17 = vld [vmem:[%s3548_s4 + $0x10] sm:$0xff] }
  0xe2   : > { %v590_v22 = vadd.f32 %v589_v19, %v480_v50  ;;  %v2922_v50 = vld [vmem:[%s3548_s4 + $0x28] sm:$0xff]  ;;  %v2917_v23 = vld [vmem:[%s3548_s4] sm:$0xff] }
  0xe3   : > { %v1047_v27 = vpop.f32.mrf.mxu0  ;;  %2947 = vmatpush.bf16.msra.mxu1 %v2922_v50  ;;  %1854 = vmatpush.bf16.msrb.mxu0 %v2922_v50 }
  0xe6   : > { %v897_v29 = vpop.f32.mrf.mxu3 }
  0xe7   : > { %v920_v32 = vadd.f32 %v897_v29, %v775_v28 }
  0xe8   : > { %v767_v30 = vpop.f32.mrf.mxu2 }
  0xe9   : > { %v3390_v35 = vadd.f32 %v767_v30, %v590_v22  ;;  %v592_v21 = vpop.f32.mrf.mxu1  ;;  %v3392_v36 = vadd.f32 %v1042_v5, %v920_v32  ;;  %v2930_v5 = vld [vmem:[%s3550_s6 + $0x8] sm:$0xff] }
  0xea   : > { %v593_v24 = vadd.f32 %v592_v21, %v483_v58  ;;  %1996 = vmatpush.bf16.msra.mxu2 %v2930_v5  ;;  %v2926_v21 = vld [vmem:[%s3449_s9 + $0x8] sm:$0xff] }
  0xeb   : > { %v1050_v39 = vpop.f32.mrf.mxu0  ;;  %1617 = vmatmul.bf16.gmra.mxu3 %v1535_v34 }
  0xee   : > { %v900_v31 = vpop.f32.mrf.mxu3  ;;  %1997 = vmatpush.bf16.msra.mxu2 %v2929_v11 }
  0xef   : > { %v921_v41 = vadd.f32 %v900_v31, %v3352_v45  ;;  %v777_v45 = vadd.f32 %v3357_v52, %v580_v44  ;;  %v2921_v52 = vld [vmem:[%s3548_s4 + $0x20] sm:$0xff] }
  0xf0   : > { %v770_v40 = vpop.f32.mrf.mxu2  ;;  %2948 = vmatpush.bf16.msra.mxu1 %v2921_v52  ;;  %1855 = vmatpush.bf16.msrb.mxu0 %v2921_v52 }
  0xf1   : > { %v3401_v33 = vadd.f32 %v770_v40, %v593_v24  ;;  %v594_v43 = vpop.f32.mrf.mxu1  ;;  %v3405_v48 = vadd.f32 %v1045_v13, %v921_v41  ;;  %1998 = vmatmul.bf16.vlgmr.msra.gmra.mxu2 %v2925_v16 }
  0xf3   : > { %v1052_v51 = vpop.f32.mrf.mxu0 }
  0xf4   : > { %2949 = vmatpush.bf16.msra.mxu1 %v2920_v7  ;;  %1856 = vmatpush.bf16.msrb.mxu0 %v2920_v7 }
  0xf6   : > { %v902_v53 = vpop.f32.mrf.mxu3 }
  0xf7   : > { %v922_v54 = vadd.f32 %v902_v53, %v777_v45 }
  0xf8   : > { %v772_v46 = vpop.f32.mrf.mxu2  ;;  %2950 = vmatpush.bf16.msra.mxu1 %v2919_v17  ;;  %1857 = vmatpush.bf16.msrb.mxu0 %v2919_v17 }
  0xf9   : > { %v3414_v42 = vpop.f32.mrf.mxu1  ;;  %v3416_v47 = vadd.f32 %v1047_v27, %v922_v54  ;;  %v3490_v46 = vld [vmem:[%s3547_s3] ss:$0 sm:$0xff] }
  0xfa   : > { %v1250_v31 = vadd.f32 %v3414_v42, %v3384_v25 }
  0xfb   : > { %v1055_v56 = vpop.f32.mrf.mxu0 }
  0xfc   : > { %1858 = vmatpush.bf16.msrb.mxu0 %v2918_v26  ;;  %2951 = vmatpush.bf16.msra.mxu1 %v2918_v26 }
  0xfe   : > { %v905_v57 = vpop.f32.mrf.mxu3 }
  0xff   : > { %v923_v59 = vadd.f32 %v905_v57, %v3366_v63 }
 0x100   : > { %v1412_v60 = vpop.f32.mrf.mxu2  ;;  %1859 = vmatpush.bf16.msrb.mxu0 %v2917_v23  ;;  %2952 = vmatpush.bf16.msra.mxu1 %v2917_v23 }
 0x101   : > { %v3422_v61 = vpop.f32.mrf.mxu1  ;;  %v3427_v58 = vadd.f32 %v1050_v39, %v923_v59  ;;  %2003 = vmatmul.bf16.gmra.mxu2 %v2926_v21  ;;  %v1436_v41 = vadd.f32 %v1412_v60, %v1250_v31 }
 0x103   : > { %v1057_v62 = vpop.f32.mrf.mxu0 }
 0x106   : > { %v907_v1 = vpop.f32.mrf.mxu3 }
 0x107   : > { %v924_v2 = vadd.f32 %v907_v1, %v779_v0 }
 0x108   : > { %v1414_v3 = vpop.f32.mrf.mxu2 }
 0x109   : > { %v3431_v63 = vpop.f32.mrf.mxu1  ;;  %v3436_v6 = vadd.f32 %v1052_v51, %v924_v2  ;;  %v1251_v51 = vadd.f32 %v3422_v61, %v3392_v36 }
 0x10a   : > { %v1252_v60 = vadd.f32 %v3431_v63, %v3405_v48 }
 0x10b   : > { %v1060_v8 = vpop.f32.mrf.mxu0  ;;  %v1437_v45 = vadd.f32 %v1414_v3, %v1251_v51 }
 0x10e   : > { %v910_v4 = vpop.f32.mrf.mxu3 }
 0x10f   : > { %v925_v9 = vadd.f32 %v910_v4, %v3377_v18 }
 0x110   : > { %v1417_v10 = vpop.f32.mrf.mxu2 }
 0x111   : > { %v3451_v12 = vpop.f32.mrf.mxu1  ;;  %v3453_v13 = vadd.f32 %v1055_v56, %v925_v9  ;;  %2008 = vmatmul.bf16.gmra.mxu2 %v2927_v49  ;;  %v1438_v0 = vadd.f32 %v1417_v10, %v1252_v60 }
 0x112   : > { %v1253_v4 = vadd.f32 %v3451_v12, %v3416_v47 }
 0x113   : > { %v1062_v14 = vpop.f32.mrf.mxu0 }
 0x116   : > { %v912_v18 = vpop.f32.mrf.mxu3 }
 0x117   : > { %v926_v19 = vadd.f32 %v912_v18, %v3390_v35 }
 0x118   : > { %v1419_v20 = vpop.f32.mrf.mxu2 }
 0x119   : > { %v3460_v15 = vpop.f32.mrf.mxu1  ;;  %v3462_v22 = vadd.f32 %v1057_v62, %v926_v19  ;;  %v1439_v9 = vadd.f32 %v1419_v20, %v1253_v4 }
 0x11a   : > { %v1254_v19 = vadd.f32 %v3460_v15, %v3427_v58 }
 0x11b   : > { %v1724_v27 = vpop.f32.mrf.mxu0 }
 0x11e   : > { %v915_v28 = vpop.f32.mrf.mxu3 }
 0x11f   : > { %v927_v29 = vadd.f32 %v915_v28, %v3401_v33  ;;  %v1893_v28 = vld [vmem:[%s3449_s9 + $0x20] sm:$0xf] }
 0x120   : > { %v1422_v30 = vpop.f32.mrf.mxu2  ;;  %v1931_v20 = vunpack.c.l.b16 %v1893_v28 }
 0x121   : > { %v3471_v32 = vpop.f32.mrf.mxu1  ;;  %v3473_v34 = vadd.f32 %v1060_v8, %v927_v29  ;;  %v2928_v8 = vld [vmem:[%s3449_s9 + $0x18] sm:$0xff]  ;;  %v1440_v47 = vadd.f32 %v1422_v30, %v1254_v19 }
 0x122   : > { %2013 = vmatmul.bf16.gmra.mxu2 %v2928_v8  ;;  %v1936_v21 = vpack.c.b16 %v1931_v20, %v1931_v20 }
 0x123   : > { %v1726_v35 = vpop.f32.mrf.mxu0 }
 0x126   : > { %v917_v24 = vpop.f32.mrf.mxu3 }
 0x127   : > { %v1255_v24 = vadd.f32 %v3471_v32, %v3436_v6 }
 0x128   : > { %v1424_v37 = vpop.f32.mrf.mxu2 }
 0x129   : > { %v3476_v38 = vpop.f32.mrf.mxu1 }
 0x12a   : > { %v1256_v49 = vadd.f32 %v3476_v38, %v3453_v13 }
 0x12b   : > { %v1729_v39 = vpop.f32.mrf.mxu0 }
 0x12e   : > { %v1598_v40 = vpop.f32.mrf.mxu3 }
 0x12f   : > { %v1622_v44 = vadd.f32 %v1598_v40, %v1436_v41 }
 0x130   : > { %v3480_v33 = vpop.f32.mrf.mxu2 }
 0x131   : > { %v3482_v43 = vpop.f32.mrf.mxu1  ;;  %v1748_v53 = vadd.f32 %v1724_v27, %v1622_v44 }
 0x132   : > { %2018 = vmatmul.bf16.gmra.mxu2 %v1936_v21 }
 0x133   : > { %v1731_v50 = vpop.f32.mrf.mxu0  ;;  %v1761_v56 = vadd.f32 %v3490_v46, %v1748_v53  ;;  %v1442_v53 = vadd.f32 %v3480_v33, %v1256_v49 }
 0x135   : > { %v1770_v61 = vmax.f32 %v1761_v56, 0.0 }
 0x136   : > { %v1600_v25 = vpop.f32.mrf.mxu3 }
 0x137   : > { %v1623_v42 = vadd.f32 %v1600_v25, %v1437_v45  ;;  %v1257_v25 = vadd.f32 %v3482_v43, %v3462_v22 }
 0x138   : > { %v1429_v54 = vpop.f32.mrf.mxu2 }
 0x139   : > { %v3492_v55 = vpop.f32.mrf.mxu1  ;;  %v1749_v57 = vadd.f32 %v1726_v35, %v1623_v42  ;;  %v1443_v42 = vadd.f32 %v1429_v54, %v1257_v25 }
 0x13a   : > { %v1258_v13 = vadd.f32 %v3492_v55, %v3473_v34 }
 0x13b   : > { %v1734_v59 = vpop.f32.mrf.mxu0  ;;  %v1762_v36 = vadd.f32 %v3490_v46, %v1749_v57 }
 0x13d   : > { %v1771_v52 = vmax.f32 %v1762_v36, 0.0 }
 0x13e   : > { %v1603_v62 = vpop.f32.mrf.mxu3 }
 0x13f   : > { %v1779_v1 = vpack.c.bf16 %v1771_v52, %v1770_v61  ;;  %v1624_v5 = vadd.f32 %v1603_v62, %v1438_v0 }
 0x140   : > { %v1432_v2 = vpop.f32.mrf.mxu2 }
 0x141   : > { %v1248_v3 = vpop.f32.mrf.mxu1  ;;  %1860 = vmatmul.bf16.vlgmr.msrb.gmra.mxu0 %v1779_v1  ;;  %v1750_v11 = vadd.f32 %v1729_v39, %v1624_v5  ;;  %v1441_v39 = vadd.f32 %v1424_v37, %v1255_v24  ;;  %v1444_v33 = vadd.f32 %v1432_v2, %v1258_v13  ;;  %v2965_v2 = vld [vmem:[%s3551_s7] ss:$0 sm:$0xff] }
 0x143   : > { %v1736_v7 = vpop.f32.mrf.mxu0  ;;  %v1763_v16 = vadd.f32 %v3490_v46, %v1750_v11 }
 0x145   : > { %v1772_v26 = vmax.f32 %v1763_v16, 0.0 }
 0x146   : > { %v1605_v14 = vpop.f32.mrf.mxu3 }
 0x147   : > { %v1625_v48 = vadd.f32 %v1605_v14, %v1439_v9  ;;  %v2966_v9 = vld [vmem:[%s3549_s5] ss:$0 sm:$0xff] }
 0x148   : > { %v1434_v63 = vpop.f32.mrf.mxu2 }
 0x149   : > { %v1751_v10 = vadd.f32 %v1731_v50, %v1625_v48 }
 0x14b   : > { %v1739_v17 = vpop.f32.mrf.mxu0  ;;  %v1764_v18 = vadd.f32 %v3490_v46, %v1751_v10 }
 0x14d   : > { %v1773_v27 = vmax.f32 %v1764_v18, 0.0 }
 0x14e   : > { %v1608_v23 = vpop.f32.mrf.mxu3 }
 0x14f   : > { %v1780_v12 = vpack.c.bf16 %v1773_v27, %v1772_v26  ;;  %v1626_v29 = vadd.f32 %v1608_v23, %v1440_v47 }
 0x151   : > { %1865 = vmatmul.bf16.vlgmr.msra.gmra.mxu1 %v1780_v12  ;;  %v1752_v31 = vadd.f32 %v1734_v59, %v1626_v29 }
 0x153   : > { %v1741_v35 = vpop.f32.mrf.mxu0  ;;  %v1765_v15 = vadd.f32 %v3490_v46, %v1752_v31 }
 0x155   : > { %v1774_v50 = vmax.f32 %v1765_v15, 0.0 }
 0x156   : > { %v1610_v40 = vpop.f32.mrf.mxu3 }
 0x157   : > { %v1627_v41 = vadd.f32 %v1610_v40, %v1441_v39 }
 0x159   : > { %v1753_v58 = vadd.f32 %v1736_v7, %v1627_v41 }
 0x15b   : > { %v1744_v44 = vpop.f32.mrf.mxu0  ;;  %v1766_v30 = vadd.f32 %v3490_v46, %v1753_v58 }
 0x15d   : > { %v1775_v51 = vmax.f32 %v1766_v30, 0.0 }
 0x15e   : > { %v1613_v45 = vpop.f32.mrf.mxu3 }
 0x15f   : > { %v1781_v6 = vpack.c.bf16 %v1775_v51, %v1774_v50  ;;  %v1628_v32 = vadd.f32 %v1613_v45, %v1442_v53 }
 0x161   : > { %1870 = vmatmul.bf16.gmra.mxu1 %v1781_v6  ;;  %v1754_v56 = vadd.f32 %v1739_v17, %v1628_v32 }
 0x163   : > { %v1746_v37 = vpop.f32.mrf.mxu0  ;;  %v1767_v36 = vadd.f32 %v3490_v46, %v1754_v56 }
 0x165   : > { %v1776_v61 = vmax.f32 %v1767_v36, 0.0 }
 0x166   : > { %v1615_v57 = vpop.f32.mrf.mxu3 }
 0x167   : > { %v1629_v59 = vadd.f32 %v1615_v57, %v1443_v42 }
 0x169   : > { %v1755_v60 = vadd.f32 %v1741_v35, %v1629_v59 }
 0x16b   : > { %v1768_v38 = vadd.f32 %v3490_v46, %v1755_v60 }
 0x16d   : > { %v1777_v52 = vmax.f32 %v1768_v38, 0.0 }
 0x16e   : > { %v1618_v62 = vpop.f32.mrf.mxu3 }
 0x16f   : > { %v1630_v0 = vadd.f32 %v1618_v62, %v1444_v33  ;;  %v1782_v1 = vpack.c.bf16 %v1777_v52, %v1776_v61 }
 0x171   : > { %v1756_v22 = vadd.f32 %v1744_v44, %v1630_v0  ;;  %1875 = vmatmul.bf16.gmra.mxu1 %v1782_v1 }
 0x173   : > { %v1769_v43 = vadd.f32 %v3490_v46, %v1756_v22 }
 0x174   : > { %v1999_v7 = vpop.f32.mrf.mxu2 }
 0x175   : > { %v1778_v3 = vmax.f32 %v1769_v43, 0.0  ;;  %v2000_v11 = vadd.f32 %v2965_v2, %v1999_v7 }
 0x176   : > { %v1620_v54 = vpop.f32.mrf.mxu3 }
 0x177   : > { %v1783_v5 = vpack.c.bf16 %v1778_v3, %v1778_v3 }
 0x17c   : > { %v2001_v8 = vpop.f32.mrf.mxu2 }
 0x17d   : > { %v2002_v17 = vadd.f32 %v2965_v2, %v2001_v8 }
 0x181   : > { %1880 = vmatmul.bf16.gmra.mxu1 %v1783_v5 }
 0x184   : > { %v2004_v34 = vpop.f32.mrf.mxu2 }
 0x185   : > { %v2005_v23 = vadd.f32 %v2965_v2, %v2004_v34 }
 0x18c   : > { %v2006_v55 = vpop.f32.mrf.mxu2 }
 0x18d   : > { %v2007_v21 = vadd.f32 %v2965_v2, %v2006_v55 }
 0x194   : > { %v2009_v4 = vpop.f32.mrf.mxu2 }
 0x195   : > { %v2010_v41 = vadd.f32 %v2965_v2, %v2009_v4 }
 0x19c   : > { %v2011_v48 = vpop.f32.mrf.mxu2 }
 0x19d   : > { %v2012_v51 = vadd.f32 %v2965_v2, %v2011_v48 }
 0x1a5   : > { %v2014_v19 = vpop.f32.mrf.mxu2 }
 0x1a6   : > { %v2015_v32 = vadd.f32 %v2965_v2, %v2014_v19 }
 0x1ad   : > { %v2016_v28 = vpop.f32.mrf.mxu2 }
 0x1ae   : > { %v2017_v59 = vadd.f32 %v2965_v2, %v2016_v28 }
 0x1b5   : > { %v2019_v39 = vpop.f32.mrf.mxu2 }
 0x1b6   : > { %v2020_v38 = vadd.f32 %v2965_v2, %v2019_v39 }
 0x1bd   : > { %v2021_v44 = vpop.f32.mrf.mxu2 }
 0x1be   : > { %v1861_v46 = vpop.f32.mrf.mxu0 }
 0x1bf   : > { %v1862_v14 = vadd.f32 %v2966_v9, %v1861_v46 }
 0x1c1   : > { %v2023_v63 = vadd.f32 %v2000_v11, %v1862_v14 }
 0x1c3   : > { %v2032_v16 = vmax.f32 %v2023_v63, 0.0 }
 0x1c5   : > { %2041 = vst [vmem:[%s3530_s25] sm:$0xff] %v2032_v16 }
 0x1c6   : > { %v1863_v10 = vpop.f32.mrf.mxu0 }
 0x1c7   : > { %v1864_v18 = vadd.f32 %v2966_v9, %v1863_v10 }
 0x1c9   : > { %v2024_v26 = vadd.f32 %v2002_v17, %v1864_v18 }
 0x1cb   : > { %v2033_v27 = vmax.f32 %v2024_v26, 0.0 }
 0x1cd   : > { %2042 = vst [vmem:[%s3530_s25 + $0x8] sm:$0xff] %v2033_v27 }
 0x1ce   : > { %v1866_v47 = vpop.f32.mrf.mxu1 }
 0x1cf   : > { %v1867_v12 = vadd.f32 %v2966_v9, %v1866_v47 }
 0x1d1   : > { %v2025_v20 = vadd.f32 %v2005_v23, %v1867_v12 }
 0x1d3   : > { %v2034_v29 = vmax.f32 %v2025_v20, 0.0 }
 0x1d5   : > { %2043 = vst [vmem:[%s3530_s25 + $0x10] sm:$0xff] %v2034_v29 }
 0x1d6   : > { %v1868_v35 = vpop.f32.mrf.mxu1 }
 0x1d7   : > { %v1869_v24 = vadd.f32 %v2966_v9, %v1868_v35 }
 0x1d9   : > { %v2026_v31 = vadd.f32 %v2007_v21, %v1869_v24 }
 0x1db   : > { %v2035_v40 = vmax.f32 %v2026_v31, 0.0 }
 0x1dd   : > { %2044 = vst [vmem:[%s3530_s25 + $0x18] sm:$0xff] %v2035_v40 }
 0x1de   : > { %v1871_v58 = vpop.f32.mrf.mxu1 }
 0x1df   : > { %v1872_v15 = vadd.f32 %v2966_v9, %v1871_v58 }
 0x1e1   : > { %v2027_v30 = vadd.f32 %v2010_v41, %v1872_v15 }
 0x1e3   : > { %v2036_v49 = vmax.f32 %v2027_v30, 0.0 }
 0x1e5   : > { %2045 = vst [vmem:[%s3530_s25 + $0x20] sm:$0xff] %v2036_v49 }
 0x1e6   : > { %v1873_v50 = vpop.f32.mrf.mxu1 }
 0x1e7   : > { %v1874_v45 = vadd.f32 %v2966_v9, %v1873_v50 }
 0x1e9   : > { %v2028_v53 = vadd.f32 %v2012_v51, %v1874_v45 }
 0x1eb   : > { %v2037_v6 = vmax.f32 %v2028_v53, 0.0 }
 0x1ed   : > { %2046 = vst [vmem:[%s3530_s25 + $0x28] sm:$0xff] %v2037_v6 }
 0x1ee   : > { %v1876_v37 = vpop.f32.mrf.mxu1 }
 0x1ef   : > { %v1877_v25 = vadd.f32 %v2966_v9, %v1876_v37 }
 0x1f1   : > { %v2029_v42 = vadd.f32 %v2015_v32, %v1877_v25 }
 0x1f3   : > { %v2038_v56 = vmax.f32 %v2029_v42, 0.0 }
 0x1f5   : > { %2047 = vst [vmem:[%s3530_s25 + $0x30] sm:$0xff] %v2038_v56 }
 0x1f6   : > { %v1878_v57 = vpop.f32.mrf.mxu1 }
 0x1f7   : > { %v1879_v36 = vadd.f32 %v2966_v9, %v1878_v57 }
 0x1f9   : > { %v2030_v60 = vadd.f32 %v2017_v59, %v1879_v36 }
 0x1fb   : > { %v2039_v13 = vmax.f32 %v2030_v60, 0.0 }
 0x1fd   : > { %2048 = vst [vmem:[%s3530_s25 + $0x38] sm:$0xff] %v2039_v13 }
 0x1fe   : > { %v1881_v33 = vpop.f32.mrf.mxu1 }
 0x1ff   : > { %v1882_v61 = vadd.f32 %v2966_v9, %v1881_v33 }
 0x201   : > { %v2031_v52 = vadd.f32 %v2020_v38, %v1882_v61 }
 0x203   : > { %v2040_v62 = vmax.f32 %v2031_v52, 0.0 }
 0x205   : > { %2049 = vst [vmem:[%s3530_s25 + $0x40] sm:$0xff] %v2040_v62 }
 0x206   : > { %v1883_v0 = vpop.f32.mrf.mxu1 }
 0x207 PF: > { %s18_s27 = sadd.s32 1, %s2976_s27  }
 0x208   : > { %p15_p4 = scmp.ge.s32.totalorder %s18_s27, 4  }
 0x20a   :  { %17 = sbr.rel (!%p15_p4) target bundleno = 1 (0x1), region = 96 }

</bundles_post_ra>
